<compile_context>
chip_gen: v6e
topology: v6e:2x2x1
jax: 0.10.0
libtpu: 0.0.40
codegen_flags: <defaults>
</compile_context>

<pallas_src>
import functools
import math

import jax
import jax.numpy as jnp
from jax.experimental import pallas as pl
from jax.experimental.pallas import tpu as pltpu

LOG_2PI = math.log(2.0 * math.pi)
_PAR = pltpu.CompilerParams(dimension_semantics=("parallel",))


# --------------------------------------------------------------------------------------
# Helpers: row flattening / tiling
# --------------------------------------------------------------------------------------
def _round_up(n, m):
    return ((n + m - 1) // m) * m


def _pick_tile(n_rows, max_tile=512):
    """Row tile: multiple of 8 (f32 sublane), as large as reasonable."""
    return min(max_tile, _round_up(n_rows, 8))


def _flatten_pad(x, rows_pad):
    """(B, T, C) -> (rows_pad, C), zero-padded along the row axis."""
    B, T, C = x.shape
    x2 = x.reshape(B * T, C)
    pad = rows_pad - B * T
    if pad:
        x2 = jnp.pad(x2, ((0, pad), (0, 0)))
    return x2


def _rows(tile, c):
    return pl.BlockSpec((tile, c), lambda i: (i, 0))


def _resident(r, c):
    return pl.BlockSpec((r, c), lambda i: (0, 0))


# --------------------------------------------------------------------------------------
# Kernel 1: fused encoder (Linear->Tanh->Linear, +spk, *mask) + proj_m + proj_s
# --------------------------------------------------------------------------------------
def _encoder_kernel(x_ref, spk_ref, m_ref, w1_ref, b1_ref, w2_ref, b2_ref,
                    wm_ref, bm_ref, ws_ref, bs_ref,
                    enc_ref, mean_ref, std_ref):
    h = jnp.tanh(jnp.dot(x_ref[...], w1_ref[...],
                         preferred_element_type=jnp.float32) + b1_ref[...])
    h = jnp.dot(h, w2_ref[...], preferred_element_type=jnp.float32) + b2_ref[...]
    enc = (h + spk_ref[...]) * m_ref[...]
    enc_ref[...] = enc.astype(enc_ref.dtype)
    mean_ref[...] = (jnp.dot(enc, wm_ref[...], preferred_element_type=jnp.float32)
                     + bm_ref[...]).astype(mean_ref.dtype)
    std_ref[...] = (jnp.dot(enc, ws_ref[...], preferred_element_type=jnp.float32)
                    + bs_ref[...]).astype(std_ref.dtype)


def pallas_encoder(x_rows, spk_rows, mask_rows, p, tile):
    R, idim = x_rows.shape
    eh = p["enc_w1"].shape[1]
    adim = p["enc_w2"].shape[1]
    odim = p["proj_m_w"].shape[1]
    return pl.pallas_call(
        _encoder_kernel,
        out_shape=(jax.ShapeDtypeStruct((R, adim), jnp.float32),
                   jax.ShapeDtypeStruct((R, odim), jnp.float32),
                   jax.ShapeDtypeStruct((R, odim), jnp.float32)),
        grid=(R // tile,),
        in_specs=[_rows(tile, idim), _rows(tile, adim), _rows(tile, 1),
                  _resident(idim, eh), _resident(1, eh),
                  _resident(eh, adim), _resident(1, adim),
                  _resident(adim, odim), _resident(1, odim),
                  _resident(adim, odim), _resident(1, odim)],
        out_specs=(_rows(tile, adim), _rows(tile, odim), _rows(tile, odim)),
        compiler_params=_PAR,
    )(x_rows, spk_rows, mask_rows,
      p["enc_w1"], p["enc_b1"].reshape(1, -1),
      p["enc_w2"], p["enc_b2"].reshape(1, -1),
      p["proj_m_w"], p["proj_m_b"].reshape(1, -1),
      p["proj_s_w"], p["proj_s_b"].reshape(1, -1))


# --------------------------------------------------------------------------------------
# Kernel 2: fused duration predictor (relu(W1) -> relu(W2) -> W3, *mask)
# --------------------------------------------------------------------------------------
def _dp_kernel(x_ref, spk_ref, m_ref, w1_ref, b1_ref, w2_ref, b2_ref, w3_ref, b3_ref, o_ref):
    x = x_ref[...] + spk_ref[...]
    h = jnp.maximum(jnp.dot(x, w1_ref[...], preferred_element_type=jnp.float32)
                    + b1_ref[...], 0.0)
    h = jnp.maximum(jnp.dot(h, w2_ref[...], preferred_element_type=jnp.float32)
                    + b2_ref[...], 0.0)
    d = jnp.dot(h, w3_ref[...], preferred_element_type=jnp.float32) + b3_ref[...]
    o_ref[...] = (d * m_ref[...]).astype(o_ref.dtype)


def pallas_duration(enc_rows, spk_rows, mask_rows, p, tile):
    R, adim = enc_rows.shape
    dpc = p["dp_w1"].shape[1]
    return pl.pallas_call(
        _dp_kernel,
        out_shape=jax.ShapeDtypeStruct((R, 1), jnp.float32),
        grid=(R // tile,),
        in_specs=[_rows(tile, adim), _rows(tile, adim), _rows(tile, 1),
                  _resident(adim, dpc), _resident(1, dpc),
                  _resident(dpc, dpc), _resident(1, dpc),
                  _resident(dpc, 1), _resident(1, 1)],
        out_specs=_rows(tile, 1),
        compiler_params=_PAR,
    )(enc_rows, spk_rows, mask_rows,
      p["dp_w1"], p["dp_b1"].reshape(1, -1),
      p["dp_w2"], p["dp_b2"].reshape(1, -1),
      p["dp_w3"], p["dp_b3"].reshape(1, -1))


# --------------------------------------------------------------------------------------
# Kernel 3: fused forward flow (mel -> z) + pitch/energy predictors + curve + z_p
# --------------------------------------------------------------------------------------
def _style_flow_kernel(x_ref, gb_ref, m_ref, gp_ref, ge_ref, logs_ref,
                       pw1_ref, pb1_ref, pw2_ref, pb2_ref,
                       ew1_ref, eb1_ref, ew2_ref, eb2_ref,
                       pew_ref, peb_ref, eew_ref, eeb_ref,
                       zp_ref, curve_ref, p_ref, e_ref):
    m = m_ref[...]
    # forward direction of the simplified invertible affine decoder flow
    z = (x_ref[...] - gb_ref[...]) * jnp.exp(-logs_ref[...]) * m
    # TODO(synk): predictors act on stop_gradient(z) in the reference; forward value identical.
    ph = jnp.maximum(jnp.dot(z, pw1_ref[...], preferred_element_type=jnp.float32)
                     + pb1_ref[...], 0.0)
    p_ref[...] = ((jnp.dot(ph, pw2_ref[...], preferred_element_type=jnp.float32)
                   + pb2_ref[...]) * m).astype(p_ref.dtype)
    eh = jnp.maximum(jnp.dot(z, ew1_ref[...], preferred_element_type=jnp.float32)
                     + eb1_ref[...], 0.0)
    e_ref[...] = ((jnp.dot(eh, ew2_ref[...], preferred_element_type=jnp.float32)
                   + eb2_ref[...]) * m).astype(e_ref.dtype)
    curve = (gp_ref[...] * pew_ref[...] + peb_ref[...]
             + ge_ref[...] * eew_ref[...] + eeb_ref[...])
    curve_ref[...] = curve.astype(curve_ref.dtype)
    zp_ref[...] = (z - curve).astype(zp_ref.dtype)


def pallas_style_flow(x_rows, gb_rows, mask_rows, gp_rows, ge_rows, p, tile):
    R, odim = x_rows.shape
    vc = p["pp_w1"].shape[1]
    return pl.pallas_call(
        _style_flow_kernel,
        out_shape=(jax.ShapeDtypeStruct((R, odim), jnp.float32),
                   jax.ShapeDtypeStruct((R, odim), jnp.float32),
                   jax.ShapeDtypeStruct((R, 1), jnp.float32),
                   jax.ShapeDtypeStruct((R, 1), jnp.float32)),
        grid=(R // tile,),
        in_specs=[_rows(tile, odim), _rows(tile, odim), _rows(tile, 1),
                  _rows(tile, 1), _rows(tile, 1), _resident(1, odim),
                  _resident(odim, vc), _resident(1, vc),
                  _resident(vc, 1), _resident(1, 1),
                  _resident(odim, vc), _resident(1, vc),
                  _resident(vc, 1), _resident(1, 1),
                  _resident(1, odim), _resident(1, odim),
                  _resident(1, odim), _resident(1, odim)],
        out_specs=(_rows(tile, odim), _rows(tile, odim), _rows(tile, 1), _rows(tile, 1)),
        compiler_params=_PAR,
    )(x_rows, gb_rows, mask_rows, gp_rows, ge_rows,
      p["dec_logs"].reshape(1, -1),
      p["pp_w1"], p["pp_b1"].reshape(1, -1),
      p["pp_w2"], p["pp_b2"].reshape(1, -1),
      p["ep_w1"], p["ep_b1"].reshape(1, -1),
      p["ep_w2"], p["ep_b2"].reshape(1, -1),
      p["pe_w"], p["pe_b"].reshape(1, -1),
      p["ee_w"], p["ee_b"].reshape(1, -1))


# --------------------------------------------------------------------------------------
# Kernel 4: MAS log-likelihood (logp1..logp4), two matmuls merged into ONE via concat
# --------------------------------------------------------------------------------------
def _mas_logp_kernel(xm_ref, xs_ref, zt_ref, o_ref):
    x_m = xm_ref[0]                    # (Tx, C)
    x_s = xs_ref[0]                    # (Tx, C)
    z_t = zt_ref[0]                    # (C, Lz)  pre-transposed in the wrapper
    o_scale = jnp.exp(-2.0 * x_s)
    logp1 = jnp.sum(-0.5 * LOG_2PI - x_s, axis=1, keepdims=True)           # (Tx, 1)
    logp4 = jnp.sum(-0.5 * x_m * x_m * o_scale, axis=1, keepdims=True)     # (Tx, 1)
    lhs = jnp.concatenate([o_scale, x_m * o_scale], axis=1)                # (Tx, 2C)
    rhs = jnp.concatenate([-0.5 * z_t * z_t, z_t], axis=0)                 # (2C, Lz)
    logp23 = jnp.dot(lhs, rhs, preferred_element_type=jnp.float32)         # (Tx, Lz)
    o_ref[0] = (logp1 + logp23 + logp4).astype(o_ref.dtype)


def pallas_mas_logp(x_m, x_s, z_t):
    B, Tx, C = x_m.shape
    Lz = z_t.shape[2]
    return pl.pallas_call(
        _mas_logp_kernel,
        out_shape=jax.ShapeDtypeStruct((B, Tx, Lz), jnp.float32),
        grid=(B,),
        in_specs=[pl.BlockSpec((1, Tx, C), lambda i: (i, 0, 0)),
                  pl.BlockSpec((1, Tx, C), lambda i: (i, 0, 0)),
                  pl.BlockSpec((1, C, Lz), lambda i: (i, 0, 0))],
        out_specs=pl.BlockSpec((1, Tx, Lz), lambda i: (i, 0, 0)),
        compiler_params=_PAR,
    )(x_m, x_s, z_t)


# --------------------------------------------------------------------------------------
# Kernel 5: length regulation (attn^T @ mean/std, MXU-native) + reparam + reverse flow
# --------------------------------------------------------------------------------------
def _expand_flow_kernel(attn_ref, mean_ref, std_ref, curve_ref, noise_ref,
                        m_ref, gb_ref, logs_ref,
                        mexp_ref, sexp_ref, ys_ref):
    attn_t = attn_ref[0]                                                   # (Lz, Tx)
    mean_exp = jnp.dot(attn_t, mean_ref[0], preferred_element_type=jnp.float32)
    std_exp = jnp.dot(attn_t, std_ref[0], preferred_element_type=jnp.float32)
    mexp_ref[0] = mean_exp.astype(mexp_ref.dtype)
    sexp_ref[0] = std_exp.astype(sexp_ref.dtype)
    z_new = mean_exp + jnp.exp(std_exp) * noise_ref[0] + curve_ref[0]
    ys_ref[0] = ((z_new * jnp.exp(logs_ref[...]) + gb_ref[0]) * m_ref[0]).astype(ys_ref.dtype)


def pallas_expand_flow(attn_t, mean, std, curve, noise, smask3, gbias3, logs):
    B, Lz, Tx = attn_t.shape
    C = mean.shape[2]
    blk = lambda a, b: pl.BlockSpec((1, a, b), lambda i: (i, 0, 0))
    return pl.pallas_call(
        _expand_flow_kernel,
        out_shape=(jax.ShapeDtypeStruct((B, Lz, C), jnp.float32),
                   jax.ShapeDtypeStruct((B, Lz, C), jnp.float32),
                   jax.ShapeDtypeStruct((B, Lz, C), jnp.float32)),
        grid=(B,),
        in_specs=[blk(Lz, Tx), blk(Tx, C), blk(Tx, C),
                  blk(Lz, C), blk(Lz, C), blk(Lz, 1), blk(1, C),
                  pl.BlockSpec((1, C), lambda i: (0, 0))],
        out_specs=(blk(Lz, C), blk(Lz, C), blk(Lz, C)),
        compiler_params=_PAR,
    )(attn_t, mean, std, curve, noise, smask3, gbias3, logs.reshape(1, -1))


# --------------------------------------------------------------------------------------
# Plain-JAX glue: masks, monotonic alignment search (sequential DP), loss
# --------------------------------------------------------------------------------------
def make_non_pad_mask(lengths, maxlen):
    return (jnp.arange(maxlen)[None, :] < lengths[:, None]).astype(jnp.float32)


def maximum_path_jax(value, mask):
    """Monotonic Alignment Search (Glow-TTS).  value, mask: (B, Tx, Ty).

    Returns the binary path already TRANSPOSED as (B, Ty, Tx) so the downstream
    length-regulation matmul is MXU-native (no in-kernel XLU transpose).
    """
    # TODO(synk): MAS is an inherently sequential DP over frames; done with lax.scan
    #             (candidate for a single resident-in-VMEM Pallas kernel at production Ty).
    NEG = -1e9
    B, Tx, Ty = value.shape
    value = value * mask
    x_range = jnp.arange(Tx)[None, :]
    val_cols = jnp.moveaxis(value, 2, 0)                  # (Ty, B, Tx)

    def fwd(v, inp):
        j, val_col = inp
        v0 = jnp.concatenate([jnp.full((B, 1), NEG, value.dtype), v[:, :-1]], axis=1)
        v1 = v
        max_mask = v1 >= v0                               # True -> "stay" at same token
        v_max = jnp.where(max_mask, v1, v0)
        index_mask = x_range <= j
        v_new = jnp.where(index_mask, v_max + val_col, NEG)
        return v_new, max_mask

    v_init = jnp.zeros((B, Tx), value.dtype)
    _, directions = jax.lax.scan(fwd, v_init, (jnp.arange(Ty), val_cols))
    direction = directions.astype(jnp.int32)              # (Ty, B, Tx)
    mask_cols = jnp.moveaxis(mask, 2, 0)                  # (Ty, B, Tx)
    direction = jnp.where(mask_cols > 0, direction, 1)

    index_init = jnp.sum(mask[:, :, 0], axis=1).astype(jnp.int32) - 1      # (B,)
    dir_cols_rev = direction[::-1]

    def bwd(index, dir_col):
        path_col = (jnp.arange(Tx)[None, :] == index[:, None]).astype(value.dtype)
        d = jnp.take_along_axis(dir_col, index[:, None], axis=1)[:, 0]
        return index + d - 1, path_col

    _, path_cols = jax.lax.scan(bwd, index_init, dir_cols_rev)
    path_t = jnp.swapaxes(path_cols[::-1], 0, 1)           # (B, Ty, Tx)
    return path_t * jnp.swapaxes(mask, 1, 2)


def fastglow_loss(z, z_mean, z_std, d_outs, p_outs, e_outs, ds, ps, es,
                  ilens, olens, logdet):
    # TODO(synk): exact FastGlowLoss source unavailable; Glow-TTS MLE + FastSpeech2-style
    #             weighted-masked MSE for duration/pitch/energy is used.
    B, Lmax, odim = z.shape
    Tmax = d_outs.shape[1]
    dmask = make_non_pad_mask(ilens, Tmax)
    omask = make_non_pad_mask(olens, Lmax)
    omask3 = omask[:, :, None]

    nll = jnp.sum(omask3 * (z_std + 0.5 * jnp.exp(-2.0 * z_std) * (z - z_mean) ** 2))
    mle_loss = (nll - jnp.sum(logdet)) / (jnp.sum(omask3) * odim) + 0.5 * LOG_2PI

    dur_target = jnp.log(ds.astype(jnp.float32) + 1.0)
    dw = dmask / jnp.maximum(jnp.sum(dmask, axis=1, keepdims=True), 1.0) / B
    duration_loss = jnp.sum(((d_outs - dur_target) ** 2) * dw * dmask)

    pw = omask3 / jnp.maximum(jnp.sum(omask3, axis=1, keepdims=True), 1.0) / B
    pitch_loss = jnp.sum(((p_outs - ps) ** 2) * pw * omask3)
    energy_loss = jnp.sum(((e_outs - es) ** 2) * pw * omask3)
    return mle_loss, duration_loss, pitch_loss, energy_loss


# --------------------------------------------------------------------------------------
# Parameters
# --------------------------------------------------------------------------------------
def _xavier(key, fan_in, fan_out):
    bound = math.sqrt(6.0 / (fan_in + fan_out))
    return jax.random.uniform(key, (fan_in, fan_out), jnp.float32, -bound, bound)


def init_params(key, cfg):
    idim, eh, adim, odim = cfg["idim"], cfg["enc_hidden"], cfg["adim"], cfg["odim"]
    utt, dpc, vc = cfg["utt_dim"], cfg["dp_chans"], cfg["var_chans"]
    shapes = [
        ("enc_w1", idim, eh), ("enc_w2", eh, adim), ("enc_wspk", utt, adim),
        ("proj_m_w", adim, odim), ("proj_s_w", adim, odim),
        ("dp_wspk", utt, adim), ("dp_w1", adim, dpc), ("dp_w2", dpc, dpc), ("dp_w3", dpc, 1),
        ("pp_w1", odim, vc), ("pp_w2", vc, 1),
        ("ep_w1", odim, vc), ("ep_w2", vc, 1),
        ("pe_w", 1, odim), ("ee_w", 1, odim),
        ("dec_wg", utt, odim),
    ]
    params = {}
    keys = jax.random.split(key, len(shapes) + 1)
    for k, (name, fi, fo) in zip(keys[:-1], shapes):
        params[name] = _xavier(k, fi, fo)
        params[name.replace("w", "b", 1)] = jnp.zeros((fo,), jnp.float32)
    params["dec_logs"] = 0.1 * jax.random.normal(keys[-1], (odim,), jnp.float32)
    return params


# --------------------------------------------------------------------------------------
# FastGlow2 forward (training branch of _forward, is_inference=False)
# --------------------------------------------------------------------------------------
def fastglow2_forward(params, text, text_lens, gold_speech, speech_lens,
                      gold_pitch, gold_energy, utt_emb, noise_key):
    B, Tmax, _ = text.shape
    Lmax, odim = gold_speech.shape[1], gold_speech.shape[2]
    adim = params["enc_w2"].shape[1]

    text_mask = make_non_pad_mask(text_lens, Tmax)         # (B, Tmax)
    speech_mask = make_non_pad_mask(speech_lens, Lmax)     # (B, Lmax)

    # ---- Tiny per-utterance speaker projections: plain JAX (no kernel-launch overhead).
    spk = utt_emb @ params["enc_wspk"] + params["enc_bspk"]        # (B, adim)
    dp_spk = utt_emb @ params["dp_wspk"] + params["dp_bspk"]       # (B, adim)
    gbias = utt_emb @ params["dec_wg"] + params["dec_bg"]          # (B, odim)

    # ---- Encoder + mean/std projections: one fused, row-tiled kernel.
    # TODO(synk): Conformer self-attention / macaron FFN / conv modules are omitted;
    #             Linear(idim,H)->Tanh->Linear(H,adim) + speaker bias stands in.
    Rt = B * Tmax
    tile_t = _pick_tile(Rt)
    Rt_pad = _round_up(Rt, tile_t)
    text_rows = _flatten_pad(text, Rt_pad)
    spk_rows = _flatten_pad(jnp.broadcast_to(spk[:, None, :], (B, Tmax, adim)), Rt_pad)
    tmask_rows = _flatten_pad(text_mask[:, :, None], Rt_pad)
    enc_rows, mean_rows, std_rows = pallas_encoder(text_rows, spk_rows, tmask_rows,
                                                   params, tile_t)
    enc_mean = mean_rows[:Rt].reshape(B, Tmax, odim)
    enc_std = std_rows[:Rt].reshape(B, Tmax, odim)

    # ---- Duration predictor on detached encoder output (fused 3-layer chain).
    # TODO(synk): reference DurationPredictor uses kernel-size-3 Conv1d + LayerNorm; 1x1 here.
    dp_spk_rows = _flatten_pad(jnp.broadcast_to(dp_spk[:, None, :], (B, Tmax, adim)), Rt_pad)
    d_rows = pallas_duration(jax.lax.stop_gradient(enc_rows), dp_spk_rows, tmask_rows,
                             params, tile_t)
    d_outs = d_rows[:Rt, 0].reshape(B, Tmax)               # masked log-durations

    # ---- Flow decoder forward (mel -> z) fused with style adaptor + z_p.
    # TODO(synk): full Glow (squeeze / invertible 1x1 conv / WN coupling) replaced by a single
    #             speaker-conditioned invertible affine transform with analytic logdet.
    Rs = B * Lmax
    tile_s = _pick_tile(Rs)
    Rs_pad = _round_up(Rs, tile_s)
    speech_rows = _flatten_pad(gold_speech, Rs_pad)
    gb_rows = _flatten_pad(jnp.broadcast_to(gbias[:, None, :], (B, Lmax, odim)), Rs_pad)
    smask_rows = _flatten_pad(speech_mask[:, :, None], Rs_pad)
    gp_rows = _flatten_pad(gold_pitch, Rs_pad)
    ge_rows = _flatten_pad(gold_energy, Rs_pad)
    zp_rows, curve_rows, p_rows, e_rows = pallas_style_flow(
        speech_rows, gb_rows, smask_rows, gp_rows, ge_rows, params, tile_s)
    z_p = zp_rows[:Rs].reshape(B, Lmax, odim)
    curve = curve_rows[:Rs].reshape(B, Lmax, odim)
    p_outs = p_rows[:Rs].reshape(B, Lmax, 1)
    e_outs = e_rows[:Rs].reshape(B, Lmax, 1)
    logdet = -jnp.sum(params["dec_logs"]) * jnp.sum(speech_mask, axis=1)   # (B,)

    # ---- Durations via MAS.  NOTE: the reference call site swaps the keyword args
    #      (x_s=encoded_texts_mean, x_m=encoded_texts_std); reproduced exactly.
    mas_x_m = jax.lax.stop_gradient(enc_std)
    mas_x_s = jax.lax.stop_gradient(enc_mean)
    z_p_t = jnp.swapaxes(jax.lax.stop_gradient(z_p), 1, 2)                 # (B, odim, Lmax)
    logp = pallas_mas_logp(mas_x_m, mas_x_s, z_p_t)                        # (B, Tmax, Lmax)
    attn_mask = text_mask[:, :, None] * speech_mask[:, None, :]
    attn_t = maximum_path_jax(logp, attn_mask)                             # (B, Lmax, Tmax)
    mas_durations = jnp.sum(attn_t, axis=1).astype(jnp.int32)              # (B, Tmax)

    # ---- Length regulation + reparameterization + reverse flow, fused per batch.
    noise = jax.random.normal(noise_key, (B, Lmax, odim), jnp.float32)
    mean_exp, std_exp, ys = pallas_expand_flow(
        attn_t, enc_mean, enc_std, curve, noise,
        speech_mask[:, :, None], gbias[:, None, :], params["dec_logs"])

    return ys, z_p, mean_exp, std_exp, d_outs, p_outs, e_outs, mas_durations, logdet


# --------------------------------------------------------------------------------------
if __name__ == "__main__":
    cfg = dict(B=2, Tmax=8, Lmax=16, idim=16, enc_hidden=32, adim=64, odim=32,
               utt_dim=16, dp_chans=32, var_chans=32)

    root = jax.random.PRNGKey(0)
    pkey, dkey = jax.random.split(root)
    params = init_params(pkey, cfg)

    ks = jax.random.split(dkey, 6)
    text = jax.random.normal(ks[0], (cfg["B"], cfg["Tmax"], cfg["idim"]), jnp.float32)
    text_lens = jnp.array([8, 6], jnp.int32)
    gold_speech = jax.random.normal(ks[1], (cfg["B"], cfg["Lmax"], cfg["odim"]), jnp.float32)
    speech_lens = jnp.array([16, 12], jnp.int32)
    gold_pitch = jax.random.normal(ks[2], (cfg["B"], cfg["Lmax"], 1), jnp.float32)
    gold_energy = jax.random.normal(ks[3], (cfg["B"], cfg["Lmax"], 1), jnp.float32)
    utt_emb = jax.random.normal(ks[4], (cfg["B"], cfg["utt_dim"]), jnp.float32)
    noise_key = ks[5]

    fwd = jax.jit(functools.partial(fastglow2_forward, params))
    outs = fwd(text, text_lens, gold_speech, speech_lens,
               gold_pitch, gold_energy, utt_emb, noise_key)
    ys, z_p, mean_exp, std_exp, d_outs, p_outs, e_outs, mas_durs, logdet = outs

    mle_l, dur_l, pit_l, ene_l = fastglow_loss(
        z_p, mean_exp, std_exp, d_outs, p_outs, e_outs,
        mas_durs, gold_pitch, gold_energy,
        text_lens.astype(jnp.float32), speech_lens.astype(jnp.float32), logdet)
    loss = mle_l + dur_l + pit_l + ene_l

    jax.block_until_ready(loss)
    jax.block_until_ready(ys)
    print("KERNEL_OK")
</pallas_src>

<mosaic_0001>
module attributes {stable_mosaic.version = 11 : i64} {
  func.func @_dp_kernel(%arg0: i32, %arg1: memref<16x64xf32, #tpu.memory_space<vmem>>, %arg2: memref<16x64xf32, #tpu.memory_space<vmem>>, %arg3: memref<16x1xf32, #tpu.memory_space<vmem>>, %arg4: memref<64x32xf32, #tpu.memory_space<vmem>>, %arg5: memref<1x32xf32, #tpu.memory_space<vmem>>, %arg6: memref<32x32xf32, #tpu.memory_space<vmem>>, %arg7: memref<1x32xf32, #tpu.memory_space<vmem>>, %arg8: memref<32x1xf32, #tpu.memory_space<vmem>>, %arg9: memref<1x1xf32, #tpu.memory_space<vmem>>, %arg10: memref<16x1xf32, #tpu.memory_space<vmem>>) attributes {dimension_semantics = [#tpu.dimension_semantics<parallel>], iteration_bounds = array<i64: 1>, scalar_prefetch = 0 : i64, scratch_operands = 0 : i64, tpu.core_type = #tpu.core_type<tc>, window_params = [{transform_indices = @transform_0, window_bounds = array<i64: 16, 64>}, {transform_indices = @transform_1, window_bounds = array<i64: 16, 64>}, {transform_indices = @transform_2, window_bounds = array<i64: 16, 1>}, {pipeline_mode = #tpu.pipeline_mode<synchronous>, transform_indices = @transform_3, window_bounds = array<i64: 64, 32>}, {pipeline_mode = #tpu.pipeline_mode<synchronous>, transform_indices = @transform_4, window_bounds = array<i64: 1, 32>}, {pipeline_mode = #tpu.pipeline_mode<synchronous>, transform_indices = @transform_5, window_bounds = array<i64: 32, 32>}, {pipeline_mode = #tpu.pipeline_mode<synchronous>, transform_indices = @transform_6, window_bounds = array<i64: 1, 32>}, {pipeline_mode = #tpu.pipeline_mode<synchronous>, transform_indices = @transform_7, window_bounds = array<i64: 32, 1>}, {pipeline_mode = #tpu.pipeline_mode<synchronous>, transform_indices = @transform_8, window_bounds = array<i64: 1, 1>}, {transform_indices = @transform_9, window_bounds = array<i64: 16, 1>}]} {
    %c0 = arith.constant 0 : index
    %c0_0 = arith.constant 0 : index
    %0 = vector.load %arg1[%c0, %c0_0] : memref<16x64xf32, #tpu.memory_space<vmem>>, vector<16x64xf32>
    %c0_1 = arith.constant 0 : index
    %c0_2 = arith.constant 0 : index
    %1 = vector.load %arg2[%c0_1, %c0_2] : memref<16x64xf32, #tpu.memory_space<vmem>>, vector<16x64xf32>
    %2 = arith.addf %0, %1 : vector<16x64xf32>
    %c0_3 = arith.constant 0 : index
    %c0_4 = arith.constant 0 : index
    %3 = vector.load %arg4[%c0_3, %c0_4] : memref<64x32xf32, #tpu.memory_space<vmem>>, vector<64x32xf32>
    %cst = arith.constant dense<0.000000e+00> : vector<16x32xf32>
    %4 = tpu.matmul %2, %3, %cst {dimension_numbers = #tpu.dot_dimension_numbers<[1], [0], [0], [1], [0, 0, 1, 1], [], []>} : vector<16x64xf32>, vector<64x32xf32>, vector<16x32xf32> -> vector<16x32xf32>
    %c0_5 = arith.constant 0 : index
    %c0_6 = arith.constant 0 : index
    %5 = vector.load %arg5[%c0_5, %c0_6] : memref<1x32xf32, #tpu.memory_space<vmem>>, vector<1x32xf32>
    %6 = vector.broadcast %5 : vector<1x32xf32> to vector<16x32xf32>
    %7 = arith.addf %4, %6 : vector<16x32xf32>
    %cst_7 = arith.constant 0.000000e+00 : f32
    %8 = vector.broadcast %cst_7 : f32 to vector<16x32xf32>
    %9 = arith.maximumf %7, %8 : vector<16x32xf32>
    %c0_8 = arith.constant 0 : index
    %c0_9 = arith.constant 0 : index
    %10 = vector.load %arg6[%c0_8, %c0_9] : memref<32x32xf32, #tpu.memory_space<vmem>>, vector<32x32xf32>
    %cst_10 = arith.constant dense<0.000000e+00> : vector<16x32xf32>
    %11 = tpu.matmul %9, %10, %cst_10 {dimension_numbers = #tpu.dot_dimension_numbers<[1], [0], [0], [1], [0, 0, 1, 1], [], []>} : vector<16x32xf32>, vector<32x32xf32>, vector<16x32xf32> -> vector<16x32xf32>
    %c0_11 = arith.constant 0 : index
    %c0_12 = arith.constant 0 : index
    %12 = vector.load %arg7[%c0_11, %c0_12] : memref<1x32xf32, #tpu.memory_space<vmem>>, vector<1x32xf32>
    %13 = vector.broadcast %12 : vector<1x32xf32> to vector<16x32xf32>
    %14 = arith.addf %11, %13 : vector<16x32xf32>
    %cst_13 = arith.constant 0.000000e+00 : f32
    %15 = vector.broadcast %cst_13 : f32 to vector<16x32xf32>
    %16 = arith.maximumf %14, %15 : vector<16x32xf32>
    %c0_14 = arith.constant 0 : index
    %c0_15 = arith.constant 0 : index
    %17 = vector.load %arg8[%c0_14, %c0_15] : memref<32x1xf32, #tpu.memory_space<vmem>>, vector<32x1xf32>
    %cst_16 = arith.constant dense<0.000000e+00> : vector<16x1xf32>
    %18 = tpu.matmul %16, %17, %cst_16 {dimension_numbers = #tpu.dot_dimension_numbers<[1], [0], [0], [1], [0, 0, 1, 1], [], []>} : vector<16x32xf32>, vector<32x1xf32>, vector<16x1xf32> -> vector<16x1xf32>
    %c0_17 = arith.constant 0 : index
    %c0_18 = arith.constant 0 : index
    %19 = vector.load %arg9[%c0_17, %c0_18] : memref<1x1xf32, #tpu.memory_space<vmem>>, vector<1x1xf32>
    %20 = vector.broadcast %19 : vector<1x1xf32> to vector<16x1xf32>
    %21 = arith.addf %18, %20 : vector<16x1xf32>
    %c0_19 = arith.constant 0 : index
    %c0_20 = arith.constant 0 : index
    %22 = vector.load %arg3[%c0_19, %c0_20] : memref<16x1xf32, #tpu.memory_space<vmem>>, vector<16x1xf32>
    %23 = arith.mulf %21, %22 : vector<16x1xf32>
    %c0_21 = arith.constant 0 : index
    %c0_22 = arith.constant 0 : index
    %24 = vector.load %arg10[%c0_21, %c0_22] : memref<16x1xf32, #tpu.memory_space<vmem>>, vector<16x1xf32>
    tpu.vector_store %arg10[%c0_21, %c0_22], %23 {strides = array<i32>} : memref<16x1xf32, #tpu.memory_space<vmem>>, vector<16x1xf32>,
    return
  }
  func.func @transform_0(%arg0: i32) -> (i32, i32) {
    %c0_i32 = arith.constant 0 : i32
    %c0_i32_0 = arith.constant 0 : i32
    return %arg0, %c0_i32 : i32, i32
  }
  func.func @transform_1(%arg0: i32) -> (i32, i32) {
    %c0_i32 = arith.constant 0 : i32
    %c0_i32_0 = arith.constant 0 : i32
    return %arg0, %c0_i32 : i32, i32
  }
  func.func @transform_2(%arg0: i32) -> (i32, i32) {
    %c0_i32 = arith.constant 0 : i32
    %c0_i32_0 = arith.constant 0 : i32
    return %arg0, %c0_i32 : i32, i32
  }
  func.func @transform_3(%arg0: i32) -> (i32, i32) {
    %c0_i32 = arith.constant 0 : i32
    %c0_i32_0 = arith.constant 0 : i32
    %c0_i32_1 = arith.constant 0 : i32
    return %c0_i32, %c0_i32_0 : i32, i32
  }
  func.func @transform_4(%arg0: i32) -> (i32, i32) {
    %c0_i32 = arith.constant 0 : i32
    %c0_i32_0 = arith.constant 0 : i32
    %c0_i32_1 = arith.constant 0 : i32
    return %c0_i32, %c0_i32_0 : i32, i32
  }
  func.func @transform_5(%arg0: i32) -> (i32, i32) {
    %c0_i32 = arith.constant 0 : i32
    %c0_i32_0 = arith.constant 0 : i32
    %c0_i32_1 = arith.constant 0 : i32
    return %c0_i32, %c0_i32_0 : i32, i32
  }
  func.func @transform_6(%arg0: i32) -> (i32, i32) {
    %c0_i32 = arith.constant 0 : i32
    %c0_i32_0 = arith.constant 0 : i32
    %c0_i32_1 = arith.constant 0 : i32
    return %c0_i32, %c0_i32_0 : i32, i32
  }
  func.func @transform_7(%arg0: i32) -> (i32, i32) {
    %c0_i32 = arith.constant 0 : i32
    %c0_i32_0 = arith.constant 0 : i32
    %c0_i32_1 = arith.constant 0 : i32
    return %c0_i32, %c0_i32_0 : i32, i32
  }
  func.func @transform_8(%arg0: i32) -> (i32, i32) {
    %c0_i32 = arith.constant 0 : i32
    %c0_i32_0 = arith.constant 0 : i32
    %c0_i32_1 = arith.constant 0 : i32
    return %c0_i32, %c0_i32_0 : i32, i32
  }
  func.func @transform_9(%arg0: i32) -> (i32, i32) {
    %c0_i32 = arith.constant 0 : i32
    %c0_i32_0 = arith.constant 0 : i32
    return %arg0, %c0_i32 : i32, i32
  }
}

module attributes {stable_mosaic.version = 11 : i64} {
  func.func @_encoder_kernel(%arg0: i32, %arg1: memref<16x16xf32, #tpu.memory_space<vmem>>, %arg2: memref<16x64xf32, #tpu.memory_space<vmem>>, %arg3: memref<16x1xf32, #tpu.memory_space<vmem>>, %arg4: memref<16x32xf32, #tpu.memory_space<vmem>>, %arg5: memref<1x32xf32, #tpu.memory_space<vmem>>, %arg6: memref<32x64xf32, #tpu.memory_space<vmem>>, %arg7: memref<1x64xf32, #tpu.memory_space<vmem>>, %arg8: memref<64x32xf32, #tpu.memory_space<vmem>>, %arg9: memref<1x32xf32, #tpu.memory_space<vmem>>, %arg10: memref<64x32xf32, #tpu.memory_space<vmem>>, %arg11: memref<1x32xf32, #tpu.memory_space<vmem>>, %arg12: memref<16x64xf32, #tpu.memory_space<vmem>>, %arg13: memref<16x32xf32, #tpu.memory_space<vmem>>, %arg14: memref<16x32xf32, #tpu.memory_space<vmem>>) attributes {dimension_semantics = [#tpu.dimension_semantics<parallel>], iteration_bounds = array<i64: 1>, scalar_prefetch = 0 : i64, scratch_operands = 0 : i64, tpu.core_type = #tpu.core_type<tc>, window_params = [{transform_indices = @transform_0, window_bounds = array<i64: 16, 16>}, {transform_indices = @transform_1, window_bounds = array<i64: 16, 64>}, {transform_indices = @transform_2, window_bounds = array<i64: 16, 1>}, {pipeline_mode = #tpu.pipeline_mode<synchronous>, transform_indices = @transform_3, window_bounds = array<i64: 16, 32>}, {pipeline_mode = #tpu.pipeline_mode<synchronous>, transform_indices = @transform_4, window_bounds = array<i64: 1, 32>}, {pipeline_mode = #tpu.pipeline_mode<synchronous>, transform_indices = @transform_5, window_bounds = array<i64: 32, 64>}, {pipeline_mode = #tpu.pipeline_mode<synchronous>, transform_indices = @transform_6, window_bounds = array<i64: 1, 64>}, {pipeline_mode = #tpu.pipeline_mode<synchronous>, transform_indices = @transform_7, window_bounds = array<i64: 64, 32>}, {pipeline_mode = #tpu.pipeline_mode<synchronous>, transform_indices = @transform_8, window_bounds = array<i64: 1, 32>}, {pipeline_mode = #tpu.pipeline_mode<synchronous>, transform_indices = @transform_9, window_bounds = array<i64: 64, 32>}, {pipeline_mode = #tpu.pipeline_mode<synchronous>, transform_indices = @transform_10, window_bounds = array<i64: 1, 32>}, {transform_indices = @transform_11, window_bounds = array<i64: 16, 64>}, {transform_indices = @transform_12, window_bounds = array<i64: 16, 32>}, {transform_indices = @transform_13, window_bounds = array<i64: 16, 32>}]} {
    %c0 = arith.constant 0 : index
    %c0_0 = arith.constant 0 : index
    %0 = vector.load %arg1[%c0, %c0_0] : memref<16x16xf32, #tpu.memory_space<vmem>>, vector<16x16xf32>
    %c0_1 = arith.constant 0 : index
    %c0_2 = arith.constant 0 : index
    %1 = vector.load %arg4[%c0_1, %c0_2] : memref<16x32xf32, #tpu.memory_space<vmem>>, vector<16x32xf32>
    %cst = arith.constant dense<0.000000e+00> : vector<16x32xf32>
    %2 = tpu.matmul %0, %1, %cst {dimension_numbers = #tpu.dot_dimension_numbers<[1], [0], [0], [1], [0, 0, 1, 1], [], []>} : vector<16x16xf32>, vector<16x32xf32>, vector<16x32xf32> -> vector<16x32xf32>
    %c0_3 = arith.constant 0 : index
    %c0_4 = arith.constant 0 : index
    %3 = vector.load %arg5[%c0_3, %c0_4] : memref<1x32xf32, #tpu.memory_space<vmem>>, vector<1x32xf32>
    %4 = vector.broadcast %3 : vector<1x32xf32> to vector<16x32xf32>
    %5 = arith.addf %2, %4 : vector<16x32xf32>
    %6 = math.tanh %5 : vector<16x32xf32>
    %c0_5 = arith.constant 0 : index
    %c0_6 = arith.constant 0 : index
    %7 = vector.load %arg6[%c0_5, %c0_6] : memref<32x64xf32, #tpu.memory_space<vmem>>, vector<32x64xf32>
    %cst_7 = arith.constant dense<0.000000e+00> : vector<16x64xf32>
    %8 = tpu.matmul %6, %7, %cst_7 {dimension_numbers = #tpu.dot_dimension_numbers<[1], [0], [0], [1], [0, 0, 1, 1], [], []>} : vector<16x32xf32>, vector<32x64xf32>, vector<16x64xf32> -> vector<16x64xf32>
    %c0_8 = arith.constant 0 : index
    %c0_9 = arith.constant 0 : index
    %9 = vector.load %arg7[%c0_8, %c0_9] : memref<1x64xf32, #tpu.memory_space<vmem>>, vector<1x64xf32>
    %10 = vector.broadcast %9 : vector<1x64xf32> to vector<16x64xf32>
    %11 = arith.addf %8, %10 : vector<16x64xf32>
    %c0_10 = arith.constant 0 : index
    %c0_11 = arith.constant 0 : index
    %12 = vector.load %arg2[%c0_10, %c0_11] : memref<16x64xf32, #tpu.memory_space<vmem>>, vector<16x64xf32>
    %13 = arith.addf %11, %12 : vector<16x64xf32>
    %c0_12 = arith.constant 0 : index
    %c0_13 = arith.constant 0 : index
    %14 = vector.load %arg3[%c0_12, %c0_13] : memref<16x1xf32, #tpu.memory_space<vmem>>, vector<16x1xf32>
    %15 = vector.broadcast %14 : vector<16x1xf32> to vector<16x64xf32>
    %16 = arith.mulf %13, %15 : vector<16x64xf32>
    %c0_14 = arith.constant 0 : index
    %c0_15 = arith.constant 0 : index
    %17 = vector.load %arg12[%c0_14, %c0_15] : memref<16x64xf32, #tpu.memory_space<vmem>>, vector<16x64xf32>
    tpu.vector_store %arg12[%c0_14, %c0_15], %16 {strides = array<i32>} : memref<16x64xf32, #tpu.memory_space<vmem>>, vector<16x64xf32>,
    %c0_16 = arith.constant 0 : index
    %c0_17 = arith.constant 0 : index
    %18 = vector.load %arg8[%c0_16, %c0_17] : memref<64x32xf32, #tpu.memory_space<vmem>>, vector<64x32xf32>
    %cst_18 = arith.constant dense<0.000000e+00> : vector<16x32xf32>
    %19 = tpu.matmul %16, %18, %cst_18 {dimension_numbers = #tpu.dot_dimension_numbers<[1], [0], [0], [1], [0, 0, 1, 1], [], []>} : vector<16x64xf32>, vector<64x32xf32>, vector<16x32xf32> -> vector<16x32xf32>
    %c0_19 = arith.constant 0 : index
    %c0_20 = arith.constant 0 : index
    %20 = vector.load %arg9[%c0_19, %c0_20] : memref<1x32xf32, #tpu.memory_space<vmem>>, vector<1x32xf32>
    %21 = vector.broadcast %20 : vector<1x32xf32> to vector<16x32xf32>
    %22 = arith.addf %19, %21 : vector<16x32xf32>
    %c0_21 = arith.constant 0 : index
    %c0_22 = arith.constant 0 : index
    %23 = vector.load %arg13[%c0_21, %c0_22] : memref<16x32xf32, #tpu.memory_space<vmem>>, vector<16x32xf32>
    tpu.vector_store %arg13[%c0_21, %c0_22], %22 {strides = array<i32>} : memref<16x32xf32, #tpu.memory_space<vmem>>, vector<16x32xf32>,
    %c0_23 = arith.constant 0 : index
    %c0_24 = arith.constant 0 : index
    %24 = vector.load %arg10[%c0_23, %c0_24] : memref<64x32xf32, #tpu.memory_space<vmem>>, vector<64x32xf32>
    %cst_25 = arith.constant dense<0.000000e+00> : vector<16x32xf32>
    %25 = tpu.matmul %16, %24, %cst_25 {dimension_numbers = #tpu.dot_dimension_numbers<[1], [0], [0], [1], [0, 0, 1, 1], [], []>} : vector<16x64xf32>, vector<64x32xf32>, vector<16x32xf32> -> vector<16x32xf32>
    %c0_26 = arith.constant 0 : index
    %c0_27 = arith.constant 0 : index
    %26 = vector.load %arg11[%c0_26, %c0_27] : memref<1x32xf32, #tpu.memory_space<vmem>>, vector<1x32xf32>
    %27 = vector.broadcast %26 : vector<1x32xf32> to vector<16x32xf32>
    %28 = arith.addf %25, %27 : vector<16x32xf32>
    %c0_28 = arith.constant 0 : index
    %c0_29 = arith.constant 0 : index
    %29 = vector.load %arg14[%c0_28, %c0_29] : memref<16x32xf32, #tpu.memory_space<vmem>>, vector<16x32xf32>
    tpu.vector_store %arg14[%c0_28, %c0_29], %28 {strides = array<i32>} : memref<16x32xf32, #tpu.memory_space<vmem>>, vector<16x32xf32>,
    return
  }
  func.func @transform_0(%arg0: i32) -> (i32, i32) {
    %c0_i32 = arith.constant 0 : i32
    %c0_i32_0 = arith.constant 0 : i32
    return %arg0, %c0_i32 : i32, i32
  }
  func.func @transform_1(%arg0: i32) -> (i32, i32) {
    %c0_i32 = arith.constant 0 : i32
    %c0_i32_0 = arith.constant 0 : i32
    return %arg0, %c0_i32 : i32, i32
  }
  func.func @transform_2(%arg0: i32) -> (i32, i32) {
    %c0_i32 = arith.constant 0 : i32
    %c0_i32_0 = arith.constant 0 : i32
    return %arg0, %c0_i32 : i32, i32
  }
  func.func @transform_3(%arg0: i32) -> (i32, i32) {
    %c0_i32 = arith.constant 0 : i32
    %c0_i32_0 = arith.constant 0 : i32
    %c0_i32_1 = arith.constant 0 : i32
    return %c0_i32, %c0_i32_0 : i32, i32
  }
  func.func @transform_4(%arg0: i32) -> (i32, i32) {
    %c0_i32 = arith.constant 0 : i32
    %c0_i32_0 = arith.constant 0 : i32
    %c0_i32_1 = arith.constant 0 : i32
    return %c0_i32, %c0_i32_0 : i32, i32
  }
  func.func @transform_5(%arg0: i32) -> (i32, i32) {
    %c0_i32 = arith.constant 0 : i32
    %c0_i32_0 = arith.constant 0 : i32
    %c0_i32_1 = arith.constant 0 : i32
    return %c0_i32, %c0_i32_0 : i32, i32
  }
  func.func @transform_6(%arg0: i32) -> (i32, i32) {
    %c0_i32 = arith.constant 0 : i32
    %c0_i32_0 = arith.constant 0 : i32
    %c0_i32_1 = arith.constant 0 : i32
    return %c0_i32, %c0_i32_0 : i32, i32
  }
  func.func @transform_7(%arg0: i32) -> (i32, i32) {
    %c0_i32 = arith.constant 0 : i32
    %c0_i32_0 = arith.constant 0 : i32
    %c0_i32_1 = arith.constant 0 : i32
    return %c0_i32, %c0_i32_0 : i32, i32
  }
  func.func @transform_8(%arg0: i32) -> (i32, i32) {
    %c0_i32 = arith.constant 0 : i32
    %c0_i32_0 = arith.constant 0 : i32
    %c0_i32_1 = arith.constant 0 : i32
    return %c0_i32, %c0_i32_0 : i32, i32
  }
  func.func @transform_9(%arg0: i32) -> (i32, i32) {
    %c0_i32 = arith.constant 0 : i32
    %c0_i32_0 = arith.constant 0 : i32
    %c0_i32_1 = arith.constant 0 : i32
    return %c0_i32, %c0_i32_0 : i32, i32
  }
  func.func @transform_10(%arg0: i32) -> (i32, i32) {
    %c0_i32 = arith.constant 0 : i32
    %c0_i32_0 = arith.constant 0 : i32
    %c0_i32_1 = arith.constant 0 : i32
    return %c0_i32, %c0_i32_0 : i32, i32
  }
  func.func @transform_11(%arg0: i32) -> (i32, i32) {
    %c0_i32 = arith.constant 0 : i32
    %c0_i32_0 = arith.constant 0 : i32
    return %arg0, %c0_i32 : i32, i32
  }
  func.func @transform_12(%arg0: i32) -> (i32, i32) {
    %c0_i32 = arith.constant 0 : i32
    %c0_i32_0 = arith.constant 0 : i32
    return %arg0, %c0_i32 : i32, i32
  }
  func.func @transform_13(%arg0: i32) -> (i32, i32) {
    %c0_i32 = arith.constant 0 : i32
    %c0_i32_0 = arith.constant 0 : i32
    return %arg0, %c0_i32 : i32, i32
  }
}

module attributes {stable_mosaic.version = 11 : i64} {
  func.func @_style_flow_kernel(%arg0: i32, %arg1: memref<32x32xf32, #tpu.memory_space<vmem>>, %arg2: memref<32x32xf32, #tpu.memory_space<vmem>>, %arg3: memref<32x1xf32, #tpu.memory_space<vmem>>, %arg4: memref<32x1xf32, #tpu.memory_space<vmem>>, %arg5: memref<32x1xf32, #tpu.memory_space<vmem>>, %arg6: memref<1x32xf32, #tpu.memory_space<vmem>>, %arg7: memref<32x32xf32, #tpu.memory_space<vmem>>, %arg8: memref<1x32xf32, #tpu.memory_space<vmem>>, %arg9: memref<32x1xf32, #tpu.memory_space<vmem>>, %arg10: memref<1x1xf32, #tpu.memory_space<vmem>>, %arg11: memref<32x32xf32, #tpu.memory_space<vmem>>, %arg12: memref<1x32xf32, #tpu.memory_space<vmem>>, %arg13: memref<32x1xf32, #tpu.memory_space<vmem>>, %arg14: memref<1x1xf32, #tpu.memory_space<vmem>>, %arg15: memref<1x32xf32, #tpu.memory_space<vmem>>, %arg16: memref<1x32xf32, #tpu.memory_space<vmem>>, %arg17: memref<1x32xf32, #tpu.memory_space<vmem>>, %arg18: memref<1x32xf32, #tpu.memory_space<vmem>>, %arg19: memref<32x32xf32, #tpu.memory_space<vmem>>, %arg20: memref<32x32xf32, #tpu.memory_space<vmem>>, %arg21: memref<32x1xf32, #tpu.memory_space<vmem>>, %arg22: memref<32x1xf32, #tpu.memory_space<vmem>>) attributes {dimension_semantics = [#tpu.dimension_semantics<parallel>], iteration_bounds = array<i64: 1>, scalar_prefetch = 0 : i64, scratch_operands = 0 : i64, tpu.core_type = #tpu.core_type<tc>, window_params = [{transform_indices = @transform_0, window_bounds = array<i64: 32, 32>}, {transform_indices = @transform_1, window_bounds = array<i64: 32, 32>}, {transform_indices = @transform_2, window_bounds = array<i64: 32, 1>}, {transform_indices = @transform_3, window_bounds = array<i64: 32, 1>}, {transform_indices = @transform_4, window_bounds = array<i64: 32, 1>}, {pipeline_mode = #tpu.pipeline_mode<synchronous>, transform_indices = @transform_5, window_bounds = array<i64: 1, 32>}, {pipeline_mode = #tpu.pipeline_mode<synchronous>, transform_indices = @transform_6, window_bounds = array<i64: 32, 32>}, {pipeline_mode = #tpu.pipeline_mode<synchronous>, transform_indices = @transform_7, window_bounds = array<i64: 1, 32>}, {pipeline_mode = #tpu.pipeline_mode<synchronous>, transform_indices = @transform_8, window_bounds = array<i64: 32, 1>}, {pipeline_mode = #tpu.pipeline_mode<synchronous>, transform_indices = @transform_9, window_bounds = array<i64: 1, 1>}, {pipeline_mode = #tpu.pipeline_mode<synchronous>, transform_indices = @transform_10, window_bounds = array<i64: 32, 32>}, {pipeline_mode = #tpu.pipeline_mode<synchronous>, transform_indices = @transform_11, window_bounds = array<i64: 1, 32>}, {pipeline_mode = #tpu.pipeline_mode<synchronous>, transform_indices = @transform_12, window_bounds = array<i64: 32, 1>}, {pipeline_mode = #tpu.pipeline_mode<synchronous>, transform_indices = @transform_13, window_bounds = array<i64: 1, 1>}, {pipeline_mode = #tpu.pipeline_mode<synchronous>, transform_indices = @transform_14, window_bounds = array<i64: 1, 32>}, {pipeline_mode = #tpu.pipeline_mode<synchronous>, transform_indices = @transform_15, window_bounds = array<i64: 1, 32>}, {pipeline_mode = #tpu.pipeline_mode<synchronous>, transform_indices = @transform_16, window_bounds = array<i64: 1, 32>}, {pipeline_mode = #tpu.pipeline_mode<synchronous>, transform_indices = @transform_17, window_bounds = array<i64: 1, 32>}, {transform_indices = @transform_18, window_bounds = array<i64: 32, 32>}, {transform_indices = @transform_19, window_bounds = array<i64: 32, 32>}, {transform_indices = @transform_20, window_bounds = array<i64: 32, 1>}, {transform_indices = @transform_21, window_bounds = array<i64: 32, 1>}]} {
    %c0 = arith.constant 0 : index
    %c0_0 = arith.constant 0 : index
    %0 = vector.load %arg3[%c0, %c0_0] : memref<32x1xf32, #tpu.memory_space<vmem>>, vector<32x1xf32>
    %c0_1 = arith.constant 0 : index
    %c0_2 = arith.constant 0 : index
    %1 = vector.load %arg1[%c0_1, %c0_2] : memref<32x32xf32, #tpu.memory_space<vmem>>, vector<32x32xf32>
    %c0_3 = arith.constant 0 : index
    %c0_4 = arith.constant 0 : index
    %2 = vector.load %arg2[%c0_3, %c0_4] : memref<32x32xf32, #tpu.memory_space<vmem>>, vector<32x32xf32>
    %3 = arith.subf %1, %2 : vector<32x32xf32>
    %c0_5 = arith.constant 0 : index
    %c0_6 = arith.constant 0 : index
    %4 = vector.load %arg6[%c0_5, %c0_6] : memref<1x32xf32, #tpu.memory_space<vmem>>, vector<1x32xf32>
    %cst = arith.constant 0.000000e+00 : f32
    %5 = vector.broadcast %cst : f32 to vector<1x32xf32>
    %6 = arith.subf %5, %4 : vector<1x32xf32>
    %7 = math.exp %6 : vector<1x32xf32>
    %8 = vector.broadcast %7 : vector<1x32xf32> to vector<32x32xf32>
    %9 = arith.mulf %3, %8 : vector<32x32xf32>
    %10 = vector.broadcast %0 : vector<32x1xf32> to vector<32x32xf32>
    %11 = arith.mulf %9, %10 : vector<32x32xf32>
    %c0_7 = arith.constant 0 : index
    %c0_8 = arith.constant 0 : index
    %12 = vector.load %arg7[%c0_7, %c0_8] : memref<32x32xf32, #tpu.memory_space<vmem>>, vector<32x32xf32>
    %cst_9 = arith.constant dense<0.000000e+00> : vector<32x32xf32>
    %13 = tpu.matmul %11, %12, %cst_9 {dimension_numbers = #tpu.dot_dimension_numbers<[1], [0], [0], [1], [0, 0, 1, 1], [], []>} : vector<32x32xf32>, vector<32x32xf32>, vector<32x32xf32> -> vector<32x32xf32>
    %c0_10 = arith.constant 0 : index
    %c0_11 = arith.constant 0 : index
    %14 = vector.load %arg8[%c0_10, %c0_11] : memref<1x32xf32, #tpu.memory_space<vmem>>, vector<1x32xf32>
    %15 = vector.broadcast %14 : vector<1x32xf32> to vector<32x32xf32>
    %16 = arith.addf %13, %15 : vector<32x32xf32>
    %cst_12 = arith.constant 0.000000e+00 : f32
    %17 = vector.broadcast %cst_12 : f32 to vector<32x32xf32>
    %18 = arith.maximumf %16, %17 : vector<32x32xf32>
    %c0_13 = arith.constant 0 : index
    %c0_14 = arith.constant 0 : index
    %19 = vector.load %arg9[%c0_13, %c0_14] : memref<32x1xf32, #tpu.memory_space<vmem>>, vector<32x1xf32>
    %cst_15 = arith.constant dense<0.000000e+00> : vector<32x1xf32>
    %20 = tpu.matmul %18, %19, %cst_15 {dimension_numbers = #tpu.dot_dimension_numbers<[1], [0], [0], [1], [0, 0, 1, 1], [], []>} : vector<32x32xf32>, vector<32x1xf32>, vector<32x1xf32> -> vector<32x1xf32>
    %c0_16 = arith.constant 0 : index
    %c0_17 = arith.constant 0 : index
    %21 = vector.load %arg10[%c0_16, %c0_17] : memref<1x1xf32, #tpu.memory_space<vmem>>, vector<1x1xf32>
    %22 = vector.broadcast %21 : vector<1x1xf32> to vector<32x1xf32>
    %23 = arith.addf %20, %22 : vector<32x1xf32>
    %24 = arith.mulf %23, %0 : vector<32x1xf32>
    %c0_18 = arith.constant 0 : index
    %c0_19 = arith.constant 0 : index
    %25 = vector.load %arg21[%c0_18, %c0_19] : memref<32x1xf32, #tpu.memory_space<vmem>>, vector<32x1xf32>
    tpu.vector_store %arg21[%c0_18, %c0_19], %24 {strides = array<i32>} : memref<32x1xf32, #tpu.memory_space<vmem>>, vector<32x1xf32>,
    %c0_20 = arith.constant 0 : index
    %c0_21 = arith.constant 0 : index
    %26 = vector.load %arg11[%c0_20, %c0_21] : memref<32x32xf32, #tpu.memory_space<vmem>>, vector<32x32xf32>
    %cst_22 = arith.constant dense<0.000000e+00> : vector<32x32xf32>
    %27 = tpu.matmul %11, %26, %cst_22 {dimension_numbers = #tpu.dot_dimension_numbers<[1], [0], [0], [1], [0, 0, 1, 1], [], []>} : vector<32x32xf32>, vector<32x32xf32>, vector<32x32xf32> -> vector<32x32xf32>
    %c0_23 = arith.constant 0 : index
    %c0_24 = arith.constant 0 : index
    %28 = vector.load %arg12[%c0_23, %c0_24] : memref<1x32xf32, #tpu.memory_space<vmem>>, vector<1x32xf32>
    %29 = vector.broadcast %28 : vector<1x32xf32> to vector<32x32xf32>
    %30 = arith.addf %27, %29 : vector<32x32xf32>
    %cst_25 = arith.constant 0.000000e+00 : f32
    %31 = vector.broadcast %cst_25 : f32 to vector<32x32xf32>
    %32 = arith.maximumf %30, %31 : vector<32x32xf32>
    %c0_26 = arith.constant 0 : index
    %c0_27 = arith.constant 0 : index
    %33 = vector.load %arg13[%c0_26, %c0_27] : memref<32x1xf32, #tpu.memory_space<vmem>>, vector<32x1xf32>
    %cst_28 = arith.constant dense<0.000000e+00> : vector<32x1xf32>
    %34 = tpu.matmul %32, %33, %cst_28 {dimension_numbers = #tpu.dot_dimension_numbers<[1], [0], [0], [1], [0, 0, 1, 1], [], []>} : vector<32x32xf32>, vector<32x1xf32>, vector<32x1xf32> -> vector<32x1xf32>
    %c0_29 = arith.constant 0 : index
    %c0_30 = arith.constant 0 : index
    %35 = vector.load %arg14[%c0_29, %c0_30] : memref<1x1xf32, #tpu.memory_space<vmem>>, vector<1x1xf32>
    %36 = vector.broadcast %35 : vector<1x1xf32> to vector<32x1xf32>
    %37 = arith.addf %34, %36 : vector<32x1xf32>
    %38 = arith.mulf %37, %0 : vector<32x1xf32>
    %c0_31 = arith.constant 0 : index
    %c0_32 = arith.constant 0 : index
    %39 = vector.load %arg22[%c0_31, %c0_32] : memref<32x1xf32, #tpu.memory_space<vmem>>, vector<32x1xf32>
    tpu.vector_store %arg22[%c0_31, %c0_32], %38 {strides = array<i32>} : memref<32x1xf32, #tpu.memory_space<vmem>>, vector<32x1xf32>,
    %c0_33 = arith.constant 0 : index
    %c0_34 = arith.constant 0 : index
    %40 = vector.load %arg4[%c0_33, %c0_34] : memref<32x1xf32, #tpu.memory_space<vmem>>, vector<32x1xf32>
    %c0_35 = arith.constant 0 : index
    %c0_36 = arith.constant 0 : index
    %41 = vector.load %arg15[%c0_35, %c0_36] : memref<1x32xf32, #tpu.memory_space<vmem>>, vector<1x32xf32>
    %42 = vector.broadcast %40 : vector<32x1xf32> to vector<32x32xf32>
    %43 = vector.broadcast %41 : vector<1x32xf32> to vector<32x32xf32>
    %44 = arith.mulf %42, %43 : vector<32x32xf32>
    %c0_37 = arith.constant 0 : index
    %c0_38 = arith.constant 0 : index
    %45 = vector.load %arg16[%c0_37, %c0_38] : memref<1x32xf32, #tpu.memory_space<vmem>>, vector<1x32xf32>
    %46 = vector.broadcast %45 : vector<1x32xf32> to vector<32x32xf32>
    %47 = arith.addf %44, %46 : vector<32x32xf32>
    %c0_39 = arith.constant 0 : index
    %c0_40 = arith.constant 0 : index
    %48 = vector.load %arg5[%c0_39, %c0_40] : memref<32x1xf32, #tpu.memory_space<vmem>>, vector<32x1xf32>
    %c0_41 = arith.constant 0 : index
    %c0_42 = arith.constant 0 : index
    %49 = vector.load %arg17[%c0_41, %c0_42] : memref<1x32xf32, #tpu.memory_space<vmem>>, vector<1x32xf32>
    %50 = vector.broadcast %48 : vector<32x1xf32> to vector<32x32xf32>
    %51 = vector.broadcast %49 : vector<1x32xf32> to vector<32x32xf32>
    %52 = arith.mulf %50, %51 : vector<32x32xf32>
    %53 = arith.addf %47, %52 : vector<32x32xf32>
    %c0_43 = arith.constant 0 : index
    %c0_44 = arith.constant 0 : index
    %54 = vector.load %arg18[%c0_43, %c0_44] : memref<1x32xf32, #tpu.memory_space<vmem>>, vector<1x32xf32>
    %55 = vector.broadcast %54 : vector<1x32xf32> to vector<32x32xf32>
    %56 = arith.addf %53, %55 : vector<32x32xf32>
    %c0_45 = arith.constant 0 : index
    %c0_46 = arith.constant 0 : index
    %57 = vector.load %arg20[%c0_45, %c0_46] : memref<32x32xf32, #tpu.memory_space<vmem>>, vector<32x32xf32>
    tpu.vector_store %arg20[%c0_45, %c0_46], %56 {strides = array<i32>} : memref<32x32xf32, #tpu.memory_space<vmem>>, vector<32x32xf32>,
    %58 = arith.subf %11, %56 : vector<32x32xf32>
    %c0_47 = arith.constant 0 : index
    %c0_48 = arith.constant 0 : index
    %59 = vector.load %arg19[%c0_47, %c0_48] : memref<32x32xf32, #tpu.memory_space<vmem>>, vector<32x32xf32>
    tpu.vector_store %arg19[%c0_47, %c0_48], %58 {strides = array<i32>} : memref<32x32xf32, #tpu.memory_space<vmem>>, vector<32x32xf32>,
    return
  }
  func.func @transform_0(%arg0: i32) -> (i32, i32) {
    %c0_i32 = arith.constant 0 : i32
    %c0_i32_0 = arith.constant 0 : i32
    return %arg0, %c0_i32 : i32, i32
  }
  func.func @transform_1(%arg0: i32) -> (i32, i32) {
    %c0_i32 = arith.constant 0 : i32
    %c0_i32_0 = arith.constant 0 : i32
    return %arg0, %c0_i32 : i32, i32
  }
  func.func @transform_2(%arg0: i32) -> (i32, i32) {
    %c0_i32 = arith.constant 0 : i32
    %c0_i32_0 = arith.constant 0 : i32
    return %arg0, %c0_i32 : i32, i32
  }
  func.func @transform_3(%arg0: i32) -> (i32, i32) {
    %c0_i32 = arith.constant 0 : i32
    %c0_i32_0 = arith.constant 0 : i32
    return %arg0, %c0_i32 : i32, i32
  }
  func.func @transform_4(%arg0: i32) -> (i32, i32) {
    %c0_i32 = arith.constant 0 : i32
    %c0_i32_0 = arith.constant 0 : i32
    return %arg0, %c0_i32 : i32, i32
  }
  func.func @transform_5(%arg0: i32) -> (i32, i32) {
    %c0_i32 = arith.constant 0 : i32
    %c0_i32_0 = arith.constant 0 : i32
    %c0_i32_1 = arith.constant 0 : i32
    return %c0_i32, %c0_i32_0 : i32, i32
  }
  func.func @transform_6(%arg0: i32) -> (i32, i32) {
    %c0_i32 = arith.constant 0 : i32
    %c0_i32_0 = arith.constant 0 : i32
    %c0_i32_1 = arith.constant 0 : i32
    return %c0_i32, %c0_i32_0 : i32, i32
  }
  func.func @transform_7(%arg0: i32) -> (i32, i32) {
    %c0_i32 = arith.constant 0 : i32
    %c0_i32_0 = arith.constant 0 : i32
    %c0_i32_1 = arith.constant 0 : i32
    return %c0_i32, %c0_i32_0 : i32, i32
  }
  func.func @transform_8(%arg0: i32) -> (i32, i32) {
    %c0_i32 = arith.constant 0 : i32
    %c0_i32_0 = arith.constant 0 : i32
    %c0_i32_1 = arith.constant 0 : i32
    return %c0_i32, %c0_i32_0 : i32, i32
  }
  func.func @transform_9(%arg0: i32) -> (i32, i32) {
    %c0_i32 = arith.constant 0 : i32
    %c0_i32_0 = arith.constant 0 : i32
    %c0_i32_1 = arith.constant 0 : i32
    return %c0_i32, %c0_i32_0 : i32, i32
  }
  func.func @transform_10(%arg0: i32) -> (i32, i32) {
    %c0_i32 = arith.constant 0 : i32
    %c0_i32_0 = arith.constant 0 : i32
    %c0_i32_1 = arith.constant 0 : i32
    return %c0_i32, %c0_i32_0 : i32, i32
  }
  func.func @transform_11(%arg0: i32) -> (i32, i32) {
    %c0_i32 = arith.constant 0 : i32
    %c0_i32_0 = arith.constant 0 : i32
    %c0_i32_1 = arith.constant 0 : i32
    return %c0_i32, %c0_i32_0 : i32, i32
  }
  func.func @transform_12(%arg0: i32) -> (i32, i32) {
    %c0_i32 = arith.constant 0 : i32
    %c0_i32_0 = arith.constant 0 : i32
    %c0_i32_1 = arith.constant 0 : i32
    return %c0_i32, %c0_i32_0 : i32, i32
  }
  func.func @transform_13(%arg0: i32) -> (i32, i32) {
    %c0_i32 = arith.constant 0 : i32
    %c0_i32_0 = arith.constant 0 : i32
    %c0_i32_1 = arith.constant 0 : i32
    return %c0_i32, %c0_i32_0 : i32, i32
  }
  func.func @transform_14(%arg0: i32) -> (i32, i32) {
    %c0_i32 = arith.constant 0 : i32
    %c0_i32_0 = arith.constant 0 : i32
    %c0_i32_1 = arith.constant 0 : i32
    return %c0_i32, %c0_i32_0 : i32, i32
  }
  func.func @transform_15(%arg0: i32) -> (i32, i32) {
    %c0_i32 = arith.constant 0 : i32
    %c0_i32_0 = arith.constant 0 : i32
    %c0_i32_1 = arith.constant 0 : i32
    return %c0_i32, %c0_i32_0 : i32, i32
  }
  func.func @transform_16(%arg0: i32) -> (i32, i32) {
    %c0_i32 = arith.constant 0 : i32
    %c0_i32_0 = arith.constant 0 : i32
    %c0_i32_1 = arith.constant 0 : i32
    return %c0_i32, %c0_i32_0 : i32, i32
  }
  func.func @transform_17(%arg0: i32) -> (i32, i32) {
    %c0_i32 = arith.constant 0 : i32
    %c0_i32_0 = arith.constant 0 : i32
    %c0_i32_1 = arith.constant 0 : i32
    return %c0_i32, %c0_i32_0 : i32, i32
  }
  func.func @transform_18(%arg0: i32) -> (i32, i32) {
    %c0_i32 = arith.constant 0 : i32
    %c0_i32_0 = arith.constant 0 : i32
    return %arg0, %c0_i32 : i32, i32
  }
  func.func @transform_19(%arg0: i32) -> (i32, i32) {
    %c0_i32 = arith.constant 0 : i32
    %c0_i32_0 = arith.constant 0 : i32
    return %arg0, %c0_i32 : i32, i32
  }
  func.func @transform_20(%arg0: i32) -> (i32, i32) {
    %c0_i32 = arith.constant 0 : i32
    %c0_i32_0 = arith.constant 0 : i32
    return %arg0, %c0_i32 : i32, i32
  }
  func.func @transform_21(%arg0: i32) -> (i32, i32) {
    %c0_i32 = arith.constant 0 : i32
    %c0_i32_0 = arith.constant 0 : i32
    return %arg0, %c0_i32 : i32, i32
  }
}

module attributes {stable_mosaic.version = 11 : i64} {
  func.func @_mas_logp_kernel(%arg0: i32, %arg1: memref<1x8x32xf32, #tpu.memory_space<vmem>>, %arg2: memref<1x8x32xf32, #tpu.memory_space<vmem>>, %arg3: memref<1x32x16xf32, #tpu.memory_space<vmem>>, %arg4: memref<1x8x16xf32, #tpu.memory_space<vmem>>) attributes {dimension_semantics = [#tpu.dimension_semantics<parallel>], iteration_bounds = array<i64: 2>, scalar_prefetch = 0 : i64, scratch_operands = 0 : i64, tpu.core_type = #tpu.core_type<tc>, window_params = [{transform_indices = @transform_0, window_bounds = array<i64: 1, 8, 32>}, {transform_indices = @transform_1, window_bounds = array<i64: 1, 8, 32>}, {transform_indices = @transform_2, window_bounds = array<i64: 1, 32, 16>}, {transform_indices = @transform_3, window_bounds = array<i64: 1, 8, 16>}]} {
    %c0 = arith.constant 0 : index
    %c0_0 = arith.constant 0 : index
    %c0_1 = arith.constant 0 : index
    %0 = vector.load %arg1[%c0, %c0_0, %c0_1] : memref<1x8x32xf32, #tpu.memory_space<vmem>>, vector<1x8x32xf32>
    %1 = vector.shape_cast %0 : vector<1x8x32xf32> to vector<8x32xf32>
    %c0_2 = arith.constant 0 : index
    %c0_3 = arith.constant 0 : index
    %c0_4 = arith.constant 0 : index
    %2 = vector.load %arg2[%c0_2, %c0_3, %c0_4] : memref<1x8x32xf32, #tpu.memory_space<vmem>>, vector<1x8x32xf32>
    %3 = vector.shape_cast %2 : vector<1x8x32xf32> to vector<8x32xf32>
    %c0_5 = arith.constant 0 : index
    %c0_6 = arith.constant 0 : index
    %c0_7 = arith.constant 0 : index
    %4 = vector.load %arg3[%c0_5, %c0_6, %c0_7] : memref<1x32x16xf32, #tpu.memory_space<vmem>>, vector<1x32x16xf32>
    %5 = vector.shape_cast %4 : vector<1x32x16xf32> to vector<32x16xf32>
    %cst = arith.constant -2.000000e+00 : f32
    %6 = vector.broadcast %cst : f32 to vector<8x32xf32>
    %7 = arith.mulf %6, %3 : vector<8x32xf32>
    %8 = math.exp %7 : vector<8x32xf32>
    %cst_8 = arith.constant -0.918938517 : f32
    %9 = vector.broadcast %cst_8 : f32 to vector<8x32xf32>
    %10 = arith.subf %9, %3 : vector<8x32xf32>
    %cst_9 = arith.constant dense<0.000000e+00> : vector<8xf32>
    %11 = vector.multi_reduction <add>, %10, %cst_9 [1] : vector<8x32xf32> to vector<8xf32>
    %12 = vector.shape_cast %11 : vector<8xf32> to vector<8x1xf32>
    %cst_10 = arith.constant -5.000000e-01 : f32
    %13 = vector.broadcast %cst_10 : f32 to vector<8x32xf32>
    %14 = arith.mulf %13, %1 : vector<8x32xf32>
    %15 = arith.mulf %14, %1 : vector<8x32xf32>
    %16 = arith.mulf %15, %8 : vector<8x32xf32>
    %cst_11 = arith.constant dense<0.000000e+00> : vector<8xf32>
    %17 = vector.multi_reduction <add>, %16, %cst_11 [1] : vector<8x32xf32> to vector<8xf32>
    %18 = vector.shape_cast %17 : vector<8xf32> to vector<8x1xf32>
    %19 = arith.mulf %1, %8 : vector<8x32xf32>
    %20 = tpu.concatenate %8, %19 in 1 : vector<8x32xf32>, vector<8x32xf32> -> vector<8x64xf32>
    %cst_12 = arith.constant -5.000000e-01 : f32
    %21 = vector.broadcast %cst_12 : f32 to vector<32x16xf32>
    %22 = arith.mulf %21, %5 : vector<32x16xf32>
    %23 = arith.mulf %22, %5 : vector<32x16xf32>
    %24 = tpu.concatenate %23, %5 in 0 : vector<32x16xf32>, vector<32x16xf32> -> vector<64x16xf32>
    %cst_13 = arith.constant dense<0.000000e+00> : vector<8x16xf32>
    %25 = tpu.matmul %20, %24, %cst_13 {dimension_numbers = #tpu.dot_dimension_numbers<[1], [0], [0], [1], [0, 0, 1, 1], [], []>} : vector<8x64xf32>, vector<64x16xf32>, vector<8x16xf32> -> vector<8x16xf32>
    %26 = vector.broadcast %12 : vector<8x1xf32> to vector<8x16xf32>
    %27 = arith.addf %26, %25 : vector<8x16xf32>
    %28 = vector.broadcast %18 : vector<8x1xf32> to vector<8x16xf32>
    %29 = arith.addf %27, %28 : vector<8x16xf32>
    %c0_14 = arith.constant 0 : index
    %c0_15 = arith.constant 0 : index
    %c0_16 = arith.constant 0 : index
    %30 = vector.load %arg4[%c0_14, %c0_15, %c0_16] : memref<1x8x16xf32, #tpu.memory_space<vmem>>, vector<1x8x16xf32>
    %31 = vector.shape_cast %30 : vector<1x8x16xf32> to vector<8x16xf32>
    %32 = vector.shape_cast %29 : vector<8x16xf32> to vector<1x8x16xf32>
    tpu.vector_store %arg4[%c0_14, %c0_15, %c0_16], %32 {strides = array<i32>} : memref<1x8x16xf32, #tpu.memory_space<vmem>>, vector<1x8x16xf32>,
    return
  }
  func.func @transform_0(%arg0: i32) -> (i32, i32, i32) {
    %c0_i32 = arith.constant 0 : i32
    %c0_i32_0 = arith.constant 0 : i32
    %c0_i32_1 = arith.constant 0 : i32
    return %arg0, %c0_i32, %c0_i32_0 : i32, i32, i32
  }
  func.func @transform_1(%arg0: i32) -> (i32, i32, i32) {
    %c0_i32 = arith.constant 0 : i32
    %c0_i32_0 = arith.constant 0 : i32
    %c0_i32_1 = arith.constant 0 : i32
    return %arg0, %c0_i32, %c0_i32_0 : i32, i32, i32
  }
  func.func @transform_2(%arg0: i32) -> (i32, i32, i32) {
    %c0_i32 = arith.constant 0 : i32
    %c0_i32_0 = arith.constant 0 : i32
    %c0_i32_1 = arith.constant 0 : i32
    return %arg0, %c0_i32, %c0_i32_0 : i32, i32, i32
  }
  func.func @transform_3(%arg0: i32) -> (i32, i32, i32) {
    %c0_i32 = arith.constant 0 : i32
    %c0_i32_0 = arith.constant 0 : i32
    %c0_i32_1 = arith.constant 0 : i32
    return %arg0, %c0_i32, %c0_i32_0 : i32, i32, i32
  }
}

module attributes {stable_mosaic.version = 11 : i64} {
  func.func @_expand_flow_kernel(%arg0: i32, %arg1: memref<1x16x8xf32, #tpu.memory_space<vmem>>, %arg2: memref<1x8x32xf32, #tpu.memory_space<vmem>>, %arg3: memref<1x8x32xf32, #tpu.memory_space<vmem>>, %arg4: memref<1x16x32xf32, #tpu.memory_space<vmem>>, %arg5: memref<1x16x32xf32, #tpu.memory_space<vmem>>, %arg6: memref<1x16x1xf32, #tpu.memory_space<vmem>>, %arg7: memref<1x1x32xf32, #tpu.memory_space<vmem>>, %arg8: memref<1x32xf32, #tpu.memory_space<vmem>>, %arg9: memref<1x16x32xf32, #tpu.memory_space<vmem>>, %arg10: memref<1x16x32xf32, #tpu.memory_space<vmem>>, %arg11: memref<1x16x32xf32, #tpu.memory_space<vmem>>) attributes {dimension_semantics = [#tpu.dimension_semantics<parallel>], iteration_bounds = array<i64: 2>, scalar_prefetch = 0 : i64, scratch_operands = 0 : i64, tpu.core_type = #tpu.core_type<tc>, window_params = [{transform_indices = @transform_0, window_bounds = array<i64: 1, 16, 8>}, {transform_indices = @transform_1, window_bounds = array<i64: 1, 8, 32>}, {transform_indices = @transform_2, window_bounds = array<i64: 1, 8, 32>}, {transform_indices = @transform_3, window_bounds = array<i64: 1, 16, 32>}, {transform_indices = @transform_4, window_bounds = array<i64: 1, 16, 32>}, {transform_indices = @transform_5, window_bounds = array<i64: 1, 16, 1>}, {transform_indices = @transform_6, window_bounds = array<i64: 1, 1, 32>}, {pipeline_mode = #tpu.pipeline_mode<synchronous>, transform_indices = @transform_7, window_bounds = array<i64: 1, 32>}, {transform_indices = @transform_8, window_bounds = array<i64: 1, 16, 32>}, {transform_indices = @transform_9, window_bounds = array<i64: 1, 16, 32>}, {transform_indices = @transform_10, window_bounds = array<i64: 1, 16, 32>}]} {
    %c0 = arith.constant 0 : index
    %c0_0 = arith.constant 0 : index
    %c0_1 = arith.constant 0 : index
    %0 = vector.load %arg1[%c0, %c0_0, %c0_1] : memref<1x16x8xf32, #tpu.memory_space<vmem>>, vector<1x16x8xf32>
    %1 = vector.shape_cast %0 : vector<1x16x8xf32> to vector<16x8xf32>
    %c0_2 = arith.constant 0 : index
    %c0_3 = arith.constant 0 : index
    %c0_4 = arith.constant 0 : index
    %2 = vector.load %arg2[%c0_2, %c0_3, %c0_4] : memref<1x8x32xf32, #tpu.memory_space<vmem>>, vector<1x8x32xf32>
    %3 = vector.shape_cast %2 : vector<1x8x32xf32> to vector<8x32xf32>
    %cst = arith.constant dense<0.000000e+00> : vector<16x32xf32>
    %4 = tpu.matmul %1, %3, %cst {dimension_numbers = #tpu.dot_dimension_numbers<[1], [0], [0], [1], [0, 0, 1, 1], [], []>} : vector<16x8xf32>, vector<8x32xf32>, vector<16x32xf32> -> vector<16x32xf32>
    %c0_5 = arith.constant 0 : index
    %c0_6 = arith.constant 0 : index
    %c0_7 = arith.constant 0 : index
    %5 = vector.load %arg3[%c0_5, %c0_6, %c0_7] : memref<1x8x32xf32, #tpu.memory_space<vmem>>, vector<1x8x32xf32>
    %6 = vector.shape_cast %5 : vector<1x8x32xf32> to vector<8x32xf32>
    %cst_8 = arith.constant dense<0.000000e+00> : vector<16x32xf32>
    %7 = tpu.matmul %1, %6, %cst_8 {dimension_numbers = #tpu.dot_dimension_numbers<[1], [0], [0], [1], [0, 0, 1, 1], [], []>} : vector<16x8xf32>, vector<8x32xf32>, vector<16x32xf32> -> vector<16x32xf32>
    %c0_9 = arith.constant 0 : index
    %c0_10 = arith.constant 0 : index
    %c0_11 = arith.constant 0 : index
    %8 = vector.load %arg9[%c0_9, %c0_10, %c0_11] : memref<1x16x32xf32, #tpu.memory_space<vmem>>, vector<1x16x32xf32>
    %9 = vector.shape_cast %8 : vector<1x16x32xf32> to vector<16x32xf32>
    %10 = vector.shape_cast %4 : vector<16x32xf32> to vector<1x16x32xf32>
    tpu.vector_store %arg9[%c0_9, %c0_10, %c0_11], %10 {strides = array<i32>} : memref<1x16x32xf32, #tpu.memory_space<vmem>>, vector<1x16x32xf32>,
    %c0_12 = arith.constant 0 : index
    %c0_13 = arith.constant 0 : index
    %c0_14 = arith.constant 0 : index
    %11 = vector.load %arg10[%c0_12, %c0_13, %c0_14] : memref<1x16x32xf32, #tpu.memory_space<vmem>>, vector<1x16x32xf32>
    %12 = vector.shape_cast %11 : vector<1x16x32xf32> to vector<16x32xf32>
    %13 = vector.shape_cast %7 : vector<16x32xf32> to vector<1x16x32xf32>
    tpu.vector_store %arg10[%c0_12, %c0_13, %c0_14], %13 {strides = array<i32>} : memref<1x16x32xf32, #tpu.memory_space<vmem>>, vector<1x16x32xf32>,
    %14 = math.exp %7 : vector<16x32xf32>
    %c0_15 = arith.constant 0 : index
    %c0_16 = arith.constant 0 : index
    %c0_17 = arith.constant 0 : index
    %15 = vector.load %arg5[%c0_15, %c0_16, %c0_17] : memref<1x16x32xf32, #tpu.memory_space<vmem>>, vector<1x16x32xf32>
    %16 = vector.shape_cast %15 : vector<1x16x32xf32> to vector<16x32xf32>
    %17 = arith.mulf %14, %16 : vector<16x32xf32>
    %18 = arith.addf %4, %17 : vector<16x32xf32>
    %c0_18 = arith.constant 0 : index
    %c0_19 = arith.constant 0 : index
    %c0_20 = arith.constant 0 : index
    %19 = vector.load %arg4[%c0_18, %c0_19, %c0_20] : memref<1x16x32xf32, #tpu.memory_space<vmem>>, vector<1x16x32xf32>
    %20 = vector.shape_cast %19 : vector<1x16x32xf32> to vector<16x32xf32>
    %21 = arith.addf %18, %20 : vector<16x32xf32>
    %c0_21 = arith.constant 0 : index
    %c0_22 = arith.constant 0 : index
    %22 = vector.load %arg8[%c0_21, %c0_22] : memref<1x32xf32, #tpu.memory_space<vmem>>, vector<1x32xf32>
    %23 = math.exp %22 : vector<1x32xf32>
    %24 = vector.broadcast %23 : vector<1x32xf32> to vector<16x32xf32>
    %25 = arith.mulf %21, %24 : vector<16x32xf32>
    %c0_23 = arith.constant 0 : index
    %c0_24 = arith.constant 0 : index
    %c0_25 = arith.constant 0 : index
    %26 = vector.load %arg7[%c0_23, %c0_24, %c0_25] : memref<1x1x32xf32, #tpu.memory_space<vmem>>, vector<1x1x32xf32>
    %27 = vector.shape_cast %26 : vector<1x1x32xf32> to vector<1x32xf32>
    %28 = vector.broadcast %27 : vector<1x32xf32> to vector<16x32xf32>
    %29 = arith.addf %25, %28 : vector<16x32xf32>
    %c0_26 = arith.constant 0 : index
    %c0_27 = arith.constant 0 : index
    %c0_28 = arith.constant 0 : index
    %30 = vector.load %arg6[%c0_26, %c0_27, %c0_28] : memref<1x16x1xf32, #tpu.memory_space<vmem>>, vector<1x16x1xf32>
    %31 = vector.shape_cast %30 : vector<1x16x1xf32> to vector<16x1xf32>
    %32 = vector.broadcast %31 : vector<16x1xf32> to vector<16x32xf32>
    %33 = arith.mulf %29, %32 : vector<16x32xf32>
    %c0_29 = arith.constant 0 : index
    %c0_30 = arith.constant 0 : index
    %c0_31 = arith.constant 0 : index
    %34 = vector.load %arg11[%c0_29, %c0_30, %c0_31] : memref<1x16x32xf32, #tpu.memory_space<vmem>>, vector<1x16x32xf32>
    %35 = vector.shape_cast %34 : vector<1x16x32xf32> to vector<16x32xf32>
    %36 = vector.shape_cast %33 : vector<16x32xf32> to vector<1x16x32xf32>
    tpu.vector_store %arg11[%c0_29, %c0_30, %c0_31], %36 {strides = array<i32>} : memref<1x16x32xf32, #tpu.memory_space<vmem>>, vector<1x16x32xf32>,
    return
  }
  func.func @transform_0(%arg0: i32) -> (i32, i32, i32) {
    %c0_i32 = arith.constant 0 : i32
    %c0_i32_0 = arith.constant 0 : i32
    %c0_i32_1 = arith.constant 0 : i32
    return %arg0, %c0_i32, %c0_i32_0 : i32, i32, i32
  }
  func.func @transform_1(%arg0: i32) -> (i32, i32, i32) {
    %c0_i32 = arith.constant 0 : i32
    %c0_i32_0 = arith.constant 0 : i32
    %c0_i32_1 = arith.constant 0 : i32
    return %arg0, %c0_i32, %c0_i32_0 : i32, i32, i32
  }
  func.func @transform_2(%arg0: i32) -> (i32, i32, i32) {
    %c0_i32 = arith.constant 0 : i32
    %c0_i32_0 = arith.constant 0 : i32
    %c0_i32_1 = arith.constant 0 : i32
    return %arg0, %c0_i32, %c0_i32_0 : i32, i32, i32
  }
  func.func @transform_3(%arg0: i32) -> (i32, i32, i32) {
    %c0_i32 = arith.constant 0 : i32
    %c0_i32_0 = arith.constant 0 : i32
    %c0_i32_1 = arith.constant 0 : i32
    return %arg0, %c0_i32, %c0_i32_0 : i32, i32, i32
  }
  func.func @transform_4(%arg0: i32) -> (i32, i32, i32) {
    %c0_i32 = arith.constant 0 : i32
    %c0_i32_0 = arith.constant 0 : i32
    %c0_i32_1 = arith.constant 0 : i32
    return %arg0, %c0_i32, %c0_i32_0 : i32, i32, i32
  }
  func.func @transform_5(%arg0: i32) -> (i32, i32, i32) {
    %c0_i32 = arith.constant 0 : i32
    %c0_i32_0 = arith.constant 0 : i32
    %c0_i32_1 = arith.constant 0 : i32
    return %arg0, %c0_i32, %c0_i32_0 : i32, i32, i32
  }
  func.func @transform_6(%arg0: i32) -> (i32, i32, i32) {
    %c0_i32 = arith.constant 0 : i32
    %c0_i32_0 = arith.constant 0 : i32
    %c0_i32_1 = arith.constant 0 : i32
    return %arg0, %c0_i32, %c0_i32_0 : i32, i32, i32
  }
  func.func @transform_7(%arg0: i32) -> (i32, i32) {
    %c0_i32 = arith.constant 0 : i32
    %c0_i32_0 = arith.constant 0 : i32
    %c0_i32_1 = arith.constant 0 : i32
    return %c0_i32, %c0_i32_0 : i32, i32
  }
  func.func @transform_8(%arg0: i32) -> (i32, i32, i32) {
    %c0_i32 = arith.constant 0 : i32
    %c0_i32_0 = arith.constant 0 : i32
    %c0_i32_1 = arith.constant 0 : i32
    return %arg0, %c0_i32, %c0_i32_0 : i32, i32, i32
  }
  func.func @transform_9(%arg0: i32) -> (i32, i32, i32) {
    %c0_i32 = arith.constant 0 : i32
    %c0_i32_0 = arith.constant 0 : i32
    %c0_i32_1 = arith.constant 0 : i32
    return %arg0, %c0_i32, %c0_i32_0 : i32, i32, i32
  }
  func.func @transform_10(%arg0: i32) -> (i32, i32, i32) {
    %c0_i32 = arith.constant 0 : i32
    %c0_i32_0 = arith.constant 0 : i32
    %c0_i32_1 = arith.constant 0 : i32
    return %arg0, %c0_i32, %c0_i32_0 : i32, i32, i32
  }
}

</mosaic_0001>

<bundles_post_ra>
// kernel: custom-call.2
= control target key start
LH: loop header
LB: loop body
LE: loop exit
PB: predicated region body
PF: predicated region fallthrough
CT: control target
= control target key end

     0   :  { %s6_s0 = inlined_call_operand.vmem [shape: f32[2,8], index: 0, kind: output, shape index: {}]  }

// kernel: custom-call.4
= control target key start
LH: loop header
LB: loop body
LE: loop exit
PB: predicated region body
PF: predicated region fallthrough
CT: control target
= control target key end

     0   :  { %s6_s0 = inlined_call_operand.vmem [shape: pred[16,2,8], index: 0, kind: output, shape index: {}]  }

// kernel: squeeze.14
= control target key start
LH: loop header
LB: loop body
LE: loop exit
PB: predicated region body
PF: predicated region fallthrough
CT: control target
= control target key end

     0   :  { %s77_s0 = inlined_call_operand.vmem [shape: f32[16], index: 0, kind: input, shape index: {}]   ;;  %s78_s1 = inlined_call_operand.hbm [shape: f32[2,8], index: 1, kind: output, shape index: {}]  }
   0x1   :  { %v6_v0 = vld [vmem:[%s77_s0] sm:$0x1] }
   0x2   :  { %2 = vsyncpa [#allocation1], 0  ;;  %7 = vst [vmem:[#allocation3] sm:$0x1] %v6_v0  ;;  %vm9_vm0 = vcmask 64512   ;;  %s59_s0 = smov 120  }
   0x3   :  { %s60_s8 = smov [#allocation0]  }
   0x4   :  { %s29_s9 = sshll.u32 %s60_s8, 4  ;;  %s30_s9 = int_to_ptr.vmem [resolvable:$true] %s29_s9 }
   0x5   :  { %s37_s10 = scalar_lea.vmem %s30_s9, 32  ;;  %p42_p1 = scmp.lt.s32.totalorder %s30_s9, %s30_s9 }
   0x6   :  { %p38_p0 = scmp.ne.s32.totalorder %s30_s9, %s37_s10  ;;  %p43_p2 = scmp.lt.s32.totalorder %s37_s10, %s37_s10 }
   0x8   :  { %p44_p3 = por %p43_p2, %p42_p1 }
   0x9   :  { %v11_v1 = vld [vmem:[#allocation3] sm:$0x1]  }
   0xa   :  { %v8_v2 = vld [vmem:[#allocation3] sm:$0x1]   ;;  %12 = vrot.lane.b32.xlu0 %v11_v1, %s59_s0  ;;  %p45_p4 = pnand %p44_p3, %p38_p0 }
   0xb   :  { %10 = vst.msk [vmem:[#allocation2] sm:$0x1] %vm9_vm0, %v8_v2  }
  0x7c   :  { %v13_v3 = vpop.permute.xlu0 %12  }
  0x7d   :  { %16 = vst.msk [vmem:[#allocation2 + $0x1] sm:$0x1] %vm9_vm0, %v13_v3  }
  0x84   :  { %v21_v4 = vld [vmem:[#allocation2] sm:$0x3] }
  0x85   :  { %24 = vst [vmem:[#allocation0] sm:$0x3] %v21_v4 }
  0x86   :  { %48 = shalt.err (!%p45_p4)
}
  0x87   :  { %32 = dma.vmem_to_hbm [thread:$0]  %s30_s9, 32, %s78_s1, [#allocation1]  }
  0x88   :  { %57 = dma.done.wait [#allocation1], 32  }
  0x89   :  { %58 = vsyncadd [#allocation1], 4294967264 }
  0x8a   :  { %34 = vsyncpa [#allocation1], 1 }

// kernel: custom-call.3
= control target key start
LH: loop header
LB: loop body
LE: loop exit
PB: predicated region body
PF: predicated region fallthrough
CT: control target
= control target key end

     0   :  { %s6_s0 = inlined_call_operand.vmem [shape: f32[16,2,8], index: 0, kind: output, shape index: {}]  }

// kernel: fastglow2_forward.9
= control target key start
LH: loop header
LB: loop body
LE: loop exit
PB: predicated region body
PF: predicated region fallthrough
CT: control target
= control target key end

     0   :  { %vm55_vm0 = vcmask 523264   ;;  %vm150_vm1 = vcmask 261120   ;;  %vm330_vm2 = vcmask 7168   ;;  %s546_s3 = inlined_call_operand.vmem [shape: f32[64,32], index: 3, kind: input, shape index: {}]   ;;  %s547_s0 = inlined_call_operand.vmem [shape: f32[16,64], index: 0, kind: input, shape index: {}]   ;;  %s548_s1 = inlined_call_operand.vmem [shape: f32[16,64], index: 1, kind: input, shape index: {}]   ;;  %s549_s5 = inlined_call_operand.vmem [shape: f32[32,32], index: 5, kind: input, shape index: {}]   ;;  %s550_s4 = inlined_call_operand.vmem [shape: f32[1,32], index: 4, kind: input, shape index: {}, may-alias: {4,6}]   ;;  %s551_s7 = inlined_call_operand.vmem [shape: f32[32,1], index: 7, kind: input, shape index: {}]   ;;  %s552_s8 = inlined_call_operand.<no memory space> [shape: f32[1,1], index: 8, kind: input, shape index: {}]   ;;  %s553_s6 = inlined_call_operand.vmem [shape: f32[1,32], index: 6, kind: input, shape index: {}, may-alias: {4,6}]   ;;  %s554_s2 = inlined_call_operand.vmem [shape: f32[16,1], index: 2, kind: input, shape index: {}]   ;;  %s555_s9 = inlined_call_operand.vmem [shape: f32[16,1], index: 9, kind: output, shape index: {}]  }
   0x1   :  { %v47_v0 = vld [vmem:[%s546_s3 + $0x38] sm:$0xff]  ;;  %v46_v1 = vld [vmem:[%s546_s3 + $0x30] sm:$0xff]  ;;  %v45_v2 = vld [vmem:[%s546_s3 + $0x28] sm:$0xff]  ;;  %v14_v29 = vstv %s552_s8 }
   0x2   :  { %368 = vmatprep.subr.mxu0 %v47_v0  ;;  %v34_v3 = vld [vmem:[%s547_s0] sm:$0xff]  ;;  %v43_v7 = vld [vmem:[%s546_s3 + $0x18] sm:$0xff]  ;;  %v42_v8 = vld [vmem:[%s546_s3 + $0x10] sm:$0xff]  ;;  %15 = vst [vmem:[#allocation2] sm:$0x1] %v14_v29 }
   0x3   :  { %369 = vmatpush3.msra.mxu0 %v47_v0  ;;  %v36_v4 = vld [vmem:[%s548_s1] sm:$0xff]  ;;  %v41_v9 = vld [vmem:[%s546_s3 + $0x8] sm:$0xff]  ;;  %v142_v14 = vld [vmem:[%s549_s5 + $0x18] sm:$0xff] }
   0x4   :  { %370 = vmatprep.subr.mxu0 %v46_v1  ;;  %v44_v5 = vld [vmem:[%s546_s3 + $0x20] sm:$0xff]  ;;  %v38_v6 = vadd.f32 %v36_v4, %v34_v3  ;;  %v35_v10 = vld [vmem:[%s547_s0 + $0x8] sm:$0xff]  ;;  %387 = vmatprep.subr.mxu1 %v142_v14  ;;  %v141_v15 = vld [vmem:[%s549_s5 + $0x10] sm:$0xff] }
   0x5   :  { %371 = vmatpush3.msra.mxu0 %v46_v1  ;;  %v37_v11 = vld [vmem:[%s548_s1 + $0x8] sm:$0xff]  ;;  %v40_v12 = vld [vmem:[%s546_s3] sm:$0xff]  ;;  %388 = vmatpush3.msra.mxu1 %v142_v14  ;;  %v237_v25 = vld [vmem:[%s551_s7 + $0x18] sm:$0xff] }
   0x6   :  { %372 = vmatprep.subr.mxu0 %v45_v2  ;;  %384 = vmatprep.mubr.msk.f32.mxu0 %vm55_vm0, %v38_v6  ;;  %v39_v13 = vadd.f32 %v37_v11, %v35_v10  ;;  %v140_v16 = vld [vmem:[%s549_s5 + $0x8] sm:$0xff]  ;;  %v139_v17 = vld [vmem:[%s549_s5] sm:$0xff]  ;;  %v236_v26 = vld [vmem:[%s551_s7 + $0x10] sm:$0xff] }
   0x7   :  { %373 = vmatpush3.msra.mxu0 %v45_v2  ;;  %389 = vmatprep.subr.mxu1 %v141_v15  ;;  %v337_v18 = vld [vmem:[%s550_s4] ss:$0 sm:$0xff]  ;;  %v235_v27 = vld [vmem:[%s551_s7 + $0x8] sm:$0xff] }
   0x8   :  { %374 = vmatprep.subr.mxu0 %v44_v5  ;;  %390 = vmatpush3.msra.mxu1 %v141_v15  ;;  %v234_v28 = vld [vmem:[%s551_s7] sm:$0xff]  ;;  %v327_v39 = vld [vmem:[%s554_s2 + $0x8] sm:$0xff] }
   0x9   :  { %375 = vmatpush3.msra.mxu0 %v44_v5  ;;  %391 = vmatprep.subr.mxu1 %v140_v16  ;;  %v340_v30 = vld [vmem:[%s553_s6] ss:$0 sm:$0xff] }
   0xa   :  { %376 = vmatprep.subr.mxu0 %v43_v7  ;;  %392 = vmatpush3.msra.mxu1 %v140_v16  ;;  %v343_v37 = vld [vmem:[#allocation2] ss:$0 sm:$0xff] }
   0xb   :  { %377 = vmatpush3.msra.mxu0 %v43_v7  ;;  %393 = vmatprep.subr.mxu1 %v139_v17  ;;  %v326_v42 = vld [vmem:[%s554_s2] sm:$0xff] }
   0xc   :  { %378 = vmatprep.subr.mxu0 %v42_v8  ;;  %394 = vmatpush3.msra.mxu1 %v139_v17 }
   0xd   :  { %379 = vmatpush3.msra.mxu0 %v42_v8  ;;  %398 = vmatprep.subr.mxu1 %v237_v25 }
   0xe   :  { %380 = vmatprep.subr.mxu0 %v41_v9 }
   0xf   :  { %381 = vmatpush3.msra.mxu0 %v41_v9 }
  0x10   :  { %382 = vmatprep.subr.mxu0 %v40_v12 }
  0x11   :  { %383 = vmatpush3.msra.mxu0 %v40_v12 }
  0x12   :  { %385 = vmatmul.mubr.msk.f32.vlgmr.msra.gmra.mxu0 %vm55_vm0, %v39_v13 }
  0xd2   :  { %v386_v19 = vpop.f32.mrf.mxu0 }
  0xd3   :  { %v134_v20 = vadd.f32 %v386_v19, %v337_v18 }
  0xd4   :  { %v128_v21 = vpop.f32.mrf.mxu0 }
  0xd5   :  { %v129_v22 = vadd.f32 %v337_v18, %v128_v21  ;;  %v138_v24 = vmax.f32 %v134_v20, 0.0 }
  0xd7   :  { %v137_v23 = vmax.f32 %v129_v22, 0.0 }
  0xd9   :  { %395 = vmatprep.mubr.msk.f32.mxu1 %vm150_vm1, %v137_v23 }
  0xda   :  { %396 = vmatmul.mubr.msk.f32.vlgmr.msra.gmra.mxu1 %vm150_vm1, %v138_v24 }
  0xdb   :  { %399 = vmatpush3.msra.mxu1 %v237_v25 }
  0xdc   :  { %400 = vmatprep.subr.mxu1 %v236_v26 }
  0xdd   :  { %401 = vmatpush3.msra.mxu1 %v236_v26 }
  0xde   :  { %402 = vmatprep.subr.mxu1 %v235_v27 }
  0xdf   :  { %403 = vmatpush3.msra.mxu1 %v235_v27 }
  0xe0   :  { %404 = vmatprep.subr.mxu1 %v234_v28 }
  0xe1   :  { %405 = vmatpush3.msra.mxu1 %v234_v28 }
 0x19a   :  { %v397_v31 = vpop.f32.mrf.mxu1 }
 0x19b   :  { %v229_v32 = vadd.f32 %v397_v31, %v340_v30 }
 0x19c   :  { %v223_v33 = vpop.f32.mrf.mxu1 }
 0x19d   :  { %v224_v34 = vadd.f32 %v340_v30, %v223_v33  ;;  %v233_v36 = vmax.f32 %v229_v32, 0.0 }
 0x19f   :  { %v232_v35 = vmax.f32 %v224_v34, 0.0 }
 0x1a1   :  { %406 = vmatprep.mubr.msk.f32.mxu1 %vm150_vm1, %v232_v35 }
 0x1a2   :  { %407 = vmatmul.mubr.msk.f32.vlgmr.msra.gmra.mxu1 %vm150_vm1, %v233_v36 }
 0x262   :  { %v408_v38 = vpop.f32.mrf.mxu1 }
 0x263   :  { %v323_v40 = vadd.f32 %v408_v38, %v343_v37 }
 0x264   :  { %v317_v41 = vpop.f32.mrf.mxu1 }
 0x265   :  { %v329_v43 = vmul.f32 %v327_v39, %v323_v40  ;;  %v318_v44 = vadd.f32 %v343_v37, %v317_v41 }
 0x267   :  { %332 = vst.msk [vmem:[%s555_s9 + $0x8] sm:$0xff] %vm330_vm2, %v329_v43  ;;  %v328_v45 = vmul.f32 %v326_v42, %v318_v44 }
 0x269   :  { %331 = vst.msk [vmem:[%s555_s9] sm:$0xff] %vm330_vm2, %v328_v45 }

// kernel: fastglow2_forward.5
= control target key start
LH: loop header
LB: loop body
LE: loop exit
PB: predicated region body
PF: predicated region fallthrough
CT: control target
= control target key end

     0   :  { %vm52_vm0 = vcmask 130048   ;;  %v556_v8 = vmov 0   ;;  %vm147_vm1 = vcmask 261120   ;;  %vm247_vm2 = vcmask 523264   ;;  %s747_s3 = inlined_call_operand.vmem [shape: f32[16,32], index: 3, kind: input, shape index: {}]   ;;  %s748_s0 = inlined_call_operand.vmem [shape: f32[16,16], index: 0, kind: input, shape index: {}]   ;;  %s749_s5 = inlined_call_operand.vmem [shape: f32[32,64], index: 5, kind: input, shape index: {}]   ;;  %s750_s2 = inlined_call_operand.vmem [shape: f32[16,1], index: 2, kind: input, shape index: {}]   ;;  %s751_s7 = inlined_call_operand.vmem [shape: f32[64,32], index: 7, kind: input, shape index: {}]   ;;  %s752_s9 = inlined_call_operand.vmem [shape: f32[64,32], index: 9, kind: input, shape index: {}]   ;;  %s753_s4 = inlined_call_operand.vmem [shape: f32[1,32], index: 4, kind: input, shape index: {}, may-alias: {4,8,10}]   ;;  %s754_s6 = inlined_call_operand.vmem [shape: f32[1,64], index: 6, kind: input, shape index: {}]   ;;  %s755_s1 = inlined_call_operand.vmem [shape: f32[16,64], index: 1, kind: input, shape index: {}]   ;;  %s756_s11 = inlined_call_operand.vmem [shape: f32[16,64], index: 11, kind: output, shape index: {0}]   ;;  %s757_s8 = inlined_call_operand.vmem [shape: f32[1,32], index: 8, kind: input, shape index: {}, may-alias: {4,8,10}]   ;;  %s758_s10 = inlined_call_operand.vmem [shape: f32[1,32], index: 10, kind: input, shape index: {}, may-alias: {4,8,10}]   ;;  %s759_s12 = inlined_call_operand.vmem [shape: f32[16,32], index: 12, kind: output, shape index: {1}]   ;;  %s760_s13 = inlined_call_operand.vmem [shape: f32[16,32], index: 13, kind: output, shape index: {2}]  }
   0x1   :  { %v44_v0 = vld [vmem:[%s747_s3 + $0x8] sm:$0xff]  ;;  %v43_v1 = vld [vmem:[%s747_s3] sm:$0xff]  ;;  %v139_v4 = vld [vmem:[%s749_s5 + $0x18] sm:$0xff]  ;;  %551 = vset.pattern.permute.xlu0 %v556_v8 }
   0x2   :  { %v41_v2 = vld [vmem:[%s748_s0] sm:$0xff]  ;;  %494 = vmatprep.subr.mxu0 %v44_v0  ;;  %v42_v3 = vld [vmem:[%s748_s0 + $0x8] sm:$0xff]  ;;  %v138_v5 = vld [vmem:[%s749_s5 + $0x10] sm:$0xff]  ;;  %501 = vmatprep.subr.mxu1 %v139_v4 }
   0x3   :  { %498 = vmatprep.mubr.msk.f32.mxu0 %vm52_vm0, %v41_v2  ;;  %495 = vmatpush3.msra.mxu0 %v44_v0  ;;  %v137_v6 = vld [vmem:[%s749_s5 + $0x8] sm:$0xff]  ;;  %v136_v7 = vld [vmem:[%s749_s5] sm:$0xff]  ;;  %v257_v10 = vld [vmem:[%s751_s7 + $0x38] sm:$0xff] }
   0x4   :  { %496 = vmatprep.subr.mxu0 %v43_v1  ;;  %502 = vmatpush3.msra.mxu1 %v139_v4  ;;  %v233_v9 = vld [vmem:[%s750_s2] sm:$0xff]  ;;  %v355_v11 = vld [vmem:[%s752_s9 + $0x38] sm:$0xff]  ;;  %v256_v12 = vld [vmem:[%s751_s7 + $0x30] sm:$0xff] }
   0x5   :  { %497 = vmatpush3.msra.mxu0 %v43_v1  ;;  %503 = vmatprep.subr.mxu1 %v138_v5  ;;  %v234_v13 = vld [vmem:[%s750_s2 + $0x8] sm:$0xff]  ;;  %v452_v15 = vld [vmem:[%s753_s4] ss:$0 sm:$0xff]  ;;  %v354_v22 = vld [vmem:[%s752_s9 + $0x30] sm:$0xff] }
   0x6   :  { %499 = vmatmul.mubr.msk.f32.vlgmr.msra.gmra.mxu0 %vm52_vm0, %v42_v3  ;;  %504 = vmatpush3.msra.mxu1 %v138_v5  ;;  %v255_v14 = vld [vmem:[%s751_s7 + $0x28] sm:$0xff]  ;;  %v254_v24 = vld [vmem:[%s751_s7 + $0x20] sm:$0xff]  ;;  %v253_v26 = vld [vmem:[%s751_s7 + $0x18] sm:$0xff] }
   0x7   :  { %505 = vmatprep.subr.mxu1 %v137_v6  ;;  %237 = vperm.xlu0 %551, %v233_v9   ;;  %v353_v23 = vld [vmem:[%s752_s9 + $0x28] sm:$0xff]  ;;  %v352_v25 = vld [vmem:[%s752_s9 + $0x20] sm:$0xff]  ;;  %v351_v27 = vld [vmem:[%s752_s9 + $0x18] sm:$0xff] }
   0x8   :  { %506 = vmatpush3.msra.mxu1 %v137_v6  ;;  %512 = vmatprep.subr.mxu0 %v257_v10  ;;  %v252_v28 = vld [vmem:[%s751_s7 + $0x10] sm:$0xff]  ;;  %v251_v30 = vld [vmem:[%s751_s7 + $0x8] sm:$0xff]  ;;  %v250_v32 = vld [vmem:[%s751_s7] sm:$0xff] }
   0x9   :  { %507 = vmatprep.subr.mxu1 %v136_v7  ;;  %513 = vmatpush3.msra.mxu0 %v257_v10  ;;  %v350_v29 = vld [vmem:[%s752_s9 + $0x10] sm:$0xff]  ;;  %v349_v31 = vld [vmem:[%s752_s9 + $0x8] sm:$0xff]  ;;  %v348_v33 = vld [vmem:[%s752_s9] sm:$0xff] }
   0xa   :  { %508 = vmatpush3.msra.mxu1 %v136_v7  ;;  %514 = vmatprep.subr.mxu0 %v256_v12  ;;  %v455_v35 = vld [vmem:[%s754_s6] ss:$0 sm:$0xff]  ;;  %v230_v37 = vld [vmem:[%s755_s1 + $0x8] sm:$0xff] }
   0xb   :  { %531 = vmatprep.subr.mxu1 %v355_v11  ;;  %515 = vmatpush3.msra.mxu0 %v256_v12  ;;  %v229_v40 = vld [vmem:[%s755_s1] sm:$0xff] }
   0xc   :  { %242 = vperm.xlu0 %551, %v234_v13   ;;  %516 = vmatprep.subr.mxu0 %v255_v14  ;;  %v458_v47 = vld [vmem:[%s757_s8] ss:$0 sm:$0xff] }
   0xd   :  { %517 = vmatpush3.msra.mxu0 %v255_v14  ;;  %v461_v48 = vld [vmem:[%s758_s10] ss:$0 sm:$0xff] }
   0xe   :  { %518 = vmatprep.subr.mxu0 %v254_v24 }
   0xf   :  { %519 = vmatpush3.msra.mxu0 %v254_v24 }
  0x10   :  { %520 = vmatprep.subr.mxu0 %v253_v26 }
  0x11   :  { %521 = vmatpush3.msra.mxu0 %v253_v26 }
  0x12   :  { %522 = vmatprep.subr.mxu0 %v252_v28 }
  0x13   :  { %523 = vmatpush3.msra.mxu0 %v252_v28 }
  0x14   :  { %524 = vmatprep.subr.mxu0 %v251_v30 }
  0x15   :  { %525 = vmatpush3.msra.mxu0 %v251_v30 }
  0x16   :  { %526 = vmatprep.subr.mxu0 %v250_v32 }
  0x17   :  { %527 = vmatpush3.msra.mxu0 %v250_v32 }
  0x82   :  { %v238_v34 = vpop.permute.xlu0 %237 }
  0x87   :  { %v243_v41 = vpop.permute.xlu0 %242 }
  0xc6   :  { %v500_v16 = vpop.f32.mrf.mxu0 }
  0xc7   :  { %v131_v17 = vadd.f32 %v500_v16, %v452_v15 }
  0xc8   :  { %v125_v18 = vpop.f32.mrf.mxu0 }
  0xc9   :  { %v126_v19 = vadd.f32 %v452_v15, %v125_v18 }
  0xcb   :  { %552 = vtanh.f32 %v126_v19 }
  0xcc   :  { %554 = vtanh.f32 %v131_v17 }
  0xd8   :  { %v553_v20 = vpop.eup %552 }
  0xd9   :  { %v555_v21 = vpop.eup %554  ;;  %509 = vmatprep.mubr.msk.f32.mxu1 %vm147_vm1, %v553_v20 }
  0xda   :  { %510 = vmatmul.mubr.msk.f32.vlgmr.msra.gmra.mxu1 %vm147_vm1, %v555_v21 }
  0xdb   :  { %532 = vmatpush3.msra.mxu1 %v355_v11 }
  0xdc   :  { %533 = vmatprep.subr.mxu1 %v354_v22 }
  0xdd   :  { %534 = vmatpush3.msra.mxu1 %v354_v22 }
  0xde   :  { %535 = vmatprep.subr.mxu1 %v353_v23 }
  0xdf   :  { %536 = vmatpush3.msra.mxu1 %v353_v23 }
  0xe0   :  { %537 = vmatprep.subr.mxu1 %v352_v25 }
  0xe1   :  { %538 = vmatpush3.msra.mxu1 %v352_v25 }
  0xe2   :  { %539 = vmatprep.subr.mxu1 %v351_v27 }
  0xe3   :  { %540 = vmatpush3.msra.mxu1 %v351_v27 }
  0xe4   :  { %541 = vmatprep.subr.mxu1 %v350_v29 }
  0xe5   :  { %542 = vmatpush3.msra.mxu1 %v350_v29 }
  0xe6   :  { %543 = vmatprep.subr.mxu1 %v349_v31 }
  0xe7   :  { %544 = vmatpush3.msra.mxu1 %v349_v31 }
  0xe8   :  { %545 = vmatprep.subr.mxu1 %v348_v33 }
  0xe9   :  { %546 = vmatpush3.msra.mxu1 %v348_v33 }
 0x19a   :  { %v511_v36 = vpop.f32.mrf.mxu1 }
 0x19b   :  { %v226_v38 = vadd.f32 %v511_v36, %v455_v35 }
 0x19c   :  { %v220_v39 = vpop.f32.mrf.mxu1 }
 0x19d   :  { %v221_v42 = vadd.f32 %v455_v35, %v220_v39  ;;  %v232_v43 = vadd.f32 %v230_v37, %v226_v38 }
 0x19f   :  { %v231_v44 = vadd.f32 %v229_v40, %v221_v42  ;;  %v246_v45 = vmul.f32 %v243_v41, %v232_v43 }
 0x1a1   :  { %v245_v46 = vmul.f32 %v238_v34, %v231_v44  ;;  %249 = vst.msk [vmem:[%s756_s11 + $0x8] sm:$0xff] %vm247_vm2, %v246_v45 }
 0x1a3   :  { %248 = vst.msk [vmem:[%s756_s11] sm:$0xff] %vm247_vm2, %v245_v46  ;;  %528 = vmatprep.mubr.msk.f32.mxu0 %vm247_vm2, %v245_v46  ;;  %547 = vmatprep.mubr.msk.f32.mxu1 %vm247_vm2, %v245_v46 }
 0x1a4   :  { %529 = vmatmul.mubr.msk.f32.vlgmr.msra.gmra.mxu0 %vm247_vm2, %v246_v45  ;;  %548 = vmatmul.mubr.msk.f32.vlgmr.msra.gmra.mxu1 %vm247_vm2, %v246_v45 }
 0x264   :  { %v530_v49 = vpop.f32.mrf.mxu0  ;;  %v549_v50 = vpop.f32.mrf.mxu1 }
 0x265   :  { %v343_v51 = vadd.f32 %v530_v49, %v458_v47  ;;  %v435_v52 = vadd.f32 %v549_v50, %v461_v48 }
 0x266   :  { %v337_v53 = vpop.f32.mrf.mxu0  ;;  %v429_v54 = vpop.f32.mrf.mxu1 }
 0x267   :  { %347 = vst.msk [vmem:[%s759_s12 + $0x8] sm:$0xff] %vm147_vm1, %v343_v51  ;;  %439 = vst.msk [vmem:[%s760_s13 + $0x8] sm:$0xff] %vm147_vm1, %v435_v52  ;;  %v338_v55 = vadd.f32 %v458_v47, %v337_v53  ;;  %v430_v56 = vadd.f32 %v461_v48, %v429_v54 }
 0x269   :  { %346 = vst.msk [vmem:[%s759_s12] sm:$0xff] %vm147_vm1, %v338_v55  ;;  %438 = vst.msk [vmem:[%s760_s13] sm:$0xff] %vm147_vm1, %v430_v56 }

// kernel: fastglow2_forward.7
= control target key start
LH: loop header
LB: loop body
LE: loop exit
PB: predicated region body
PF: predicated region fallthrough
CT: control target
= control target key end

     0   :  { %s478_s12 = smov 0   ;;  %s506_s0 = inlined_call_operand.vmem [shape: f32[2,8,32], index: 0, kind: input, shape index: {}]   ;;  %s507_s1 = inlined_call_operand.vmem [shape: f32[2,8,32], index: 1, kind: input, shape index: {}]   ;;  %s508_s2 = inlined_call_operand.vmem [shape: f32[2,32,16], index: 2, kind: input, shape index: {}]   ;;  %s509_s3 = inlined_call_operand.vmem [shape: f32[2,8,16], index: 3, kind: output, shape index: {}]  }
   0x1 LB: > { %s392_s13 = sadd.s32 4294967295, %s453_s12   ;;  %p396_p0 = scmp.ge.s32.totalorder %s453_s12, 1  ;;  %s453_s12 = sphi %s478_s12, %s13_s12  }
   0x2   : > { %p155_p1 = scmp.lt.s32.totalorder %s453_s12, 3 }
   0x4   : > { %p156_p2 = pnand %p396_p0, %p155_p1 }
   0x5   : > { %p186_p3 = scmp.lt.s32.totalorder (!%p156_p2), %s392_s13, 1  ;;  %s457_s25 = smov (!%p156_p2), 32  }
   0x6   : > { %159 = sbr.rel (%p156_p2) target bundleno = 349 (0x15d), region = 32 }
   0xb   : > { %v455_v0 = vmov 0.0   ;;  %s511_s13 = smov (!%p186_p3, %s392_s13), 1  ;;  %vm456_vm0 = vmmov 0   ;;  %vm213_vm1 = vcmask 261120   ;;  %vm237_vm2 = vcmask 523264  }
   0xc   : > { %415 = vmatprep.subr.mxu0 %v455_v0  ;;  %s486_s14 = sshll.u32 %s511_s13, 3  ;;  %s405_s15 = sshll.u32 %s511_s13, 5  ;;  %431 = vmatprep.mubr.msk.f32.mxu0 %vm456_vm0, %v455_v0  ;;  %vm313_vm3 = vcmask 130048  }
   0xd   : > { %s193_s18 = scalar_lea.vmem %s507_s1, %s486_s14  ;;  %s198_s21 = scalar_lea.vmem %s508_s2, %s405_s15 }
   0xe   : > { %v204_v1 = vld [vmem:[%s193_s18] sm:$0xff]  ;;  %v208_v3 = vld [vmem:[%s198_s21 + $0x18] sm:$0xff]  ;;  %v207_v4 = vld [vmem:[%s198_s21 + $0x10] sm:$0xff]  ;;  %s189_s24 = scalar_lea.vmem %s506_s0, %s486_s14  ;;  %s202_s28 = scalar_lea.vmem %s509_s3, %s486_s14 }
   0xf   : > { %v209_v2 = vmul.f32 -2.0, %v204_v1  ;;  %v232_v5 = vmul.f32 -0.5, %v208_v3  ;;  %416 = vmatpush3.msra.mxu0 %v208_v3  ;;  %v206_v7 = vld [vmem:[%s198_s21 + $0x8] sm:$0xff]  ;;  %v231_v8 = vmul.f32 -0.5, %v207_v4  ;;  %v205_v9 = vld [vmem:[%s198_s21] sm:$0xff] }
  0x10   : > { %417 = vmatprep.subr.mxu0 %v455_v0  ;;  %v230_v10 = vmul.f32 -0.5, %v206_v7  ;;  %v229_v12 = vmul.f32 -0.5, %v205_v9  ;;  %v203_v14 = vld [vmem:[%s189_s24] sm:$0xff]  ;;  %v212_v23 = vsub.f32 -0.9189385, %v204_v1 }
  0x11   : > { %v210_v6 = vmul.f32 1.442695, %v209_v2  ;;  %418 = vmatpush3.msra.mxu0 %v207_v4  ;;  %v236_v11 = vmul.f32 %v232_v5, %v208_v3  ;;  %v235_v13 = vmul.f32 %v231_v8, %v207_v4  ;;  %v217_v16 = vmul.f32 -0.5, %v203_v14 }
  0x12   : > { %419 = vmatprep.subr.mxu0 %v455_v0  ;;  %v234_v15 = vmul.f32 %v230_v10, %v206_v7  ;;  %v233_v17 = vmul.f32 %v229_v12, %v205_v9  ;;  %v214_v24 = vsel %vm213_vm1, %v212_v23, 0.0 }
  0x13   : > { %445 = vpow2.f32 %v210_v6  ;;  %420 = vmatpush3.msra.mxu0 %v206_v7  ;;  %v218_v18 = vmul.f32 %v217_v16, %v203_v14 }
  0x14   : > { %421 = vmatprep.subr.mxu0 %v455_v0 }
  0x15   : > { %422 = vmatpush3.msra.mxu0 %v205_v9 }
  0x16   : > { %423 = vmatprep.subr.mxu0 %v455_v0 }
  0x17   : > { %424 = vmatpush3.msra.mxu0 %v236_v11 }
  0x18   : > { %425 = vmatprep.subr.mxu0 %v455_v0 }
  0x19   : > { %426 = vmatpush3.msra.mxu0 %v235_v13 }
  0x1a   : > { %427 = vmatprep.subr.mxu0 %v455_v0 }
  0x1b   : > { %428 = vmatpush3.msra.mxu0 %v234_v15 }
  0x1c   : > { %429 = vmatprep.subr.mxu0 %v455_v0 }
  0x1d   : > { %430 = vmatpush3.msra.mxu0 %v233_v17 }
  0x20   : > { %v446_v19 = vpop.eup %445 }
  0x21   : > { %v223_v20 = vmul.f32 %v446_v19, %v203_v14  ;;  %v219_v21 = vmul.f32 %v446_v19, %v218_v18 }
  0x23   : > { %225 = vrot.lane.b32.xlu0 %v223_v20, %s457_s25  ;;  %v220_v22 = vsel %vm213_vm1, %v219_v21, 0.0 }
  0x24   : > { %221 = vadd.xlane.f32.xlu1 %v220_v22 }
  0x42   : > { %215 = vadd.xlane.f32.xlu0 %v214_v24 }
  0x95   : > { %v226_v25 = vpop.permute.xlu0 %225 }
  0x96   : > { %v228_v26 = vsel %vm213_vm1, %v446_v19, %v226_v25 }
  0x97   : > { %432 = vmatmul.mubr.msk.f32.vlgmr.msra.gmra.mxu0 %vm237_vm2, %v228_v26 }
  0xad   : > { %v222_v29 = vpop.xlane.xlu1 %221 }
  0xcb   : > { %v216_v27 = vpop.xlane.xlu0 %215 }
 0x157   : > { %v307_v28 = vpop.f32.mrf.mxu0 }
 0x158   : > { %v311_v30 = vadd.f32 %v307_v28, %v216_v27 }
 0x159   : > { %v433_v31 = vpop.f32.mrf.mxu0 }
 0x15a   : > { %v312_v32 = vadd.f32 %v311_v30, %v222_v29 }
 0x15c   : > { %314 = vst.msk [vmem:[%s202_s28] sm:$0xff] %vm313_vm3, %v312_v32 }
 0x15d PF: > { %s13_s12 = sadd.s32 1, %s453_s12  }
 0x15e   : > { %p10_p4 = scmp.ge.s32.totalorder %s13_s12, 4  }
 0x160   :  { %12 = sbr.rel (!%p10_p4) target bundleno = 1 (0x1), region = 68 }

// kernel: fastglow2_forward.6
= control target key start
LH: loop header
LB: loop body
LE: loop exit
PB: predicated region body
PF: predicated region fallthrough
CT: control target
= control target key end

     0   :  { %v808_v0 = vmov 0   ;;  %v88_v22 = vlaneseq  ;;  %vm132_vm0 = vcmask 261120   ;;  %vm346_vm1 = vcmask 7168   ;;  %s1164_s2 = inlined_call_operand.vmem [shape: f32[32,1], index: 2, kind: input, shape index: {}]   ;;  %s1165_s6 = inlined_call_operand.vmem [shape: f32[32,32], index: 6, kind: input, shape index: {}]   ;;  %s1166_s3 = inlined_call_operand.vmem [shape: f32[32,1], index: 3, kind: input, shape index: {}]   ;;  %s1167_s10 = inlined_call_operand.vmem [shape: f32[32,32], index: 10, kind: input, shape index: {}]   ;;  %s1168_s4 = inlined_call_operand.vmem [shape: f32[32,1], index: 4, kind: input, shape index: {}]   ;;  %s1169_s8 = inlined_call_operand.vmem [shape: f32[32,1], index: 8, kind: input, shape index: {}]   ;;  %s1170_s5 = inlined_call_operand.vmem [shape: f32[1,32], index: 5, kind: input, shape index: {}]   ;;  %s1171_s0 = inlined_call_operand.vmem [shape: f32[32,32], index: 0, kind: input, shape index: {}]   ;;  %s1172_s1 = inlined_call_operand.vmem [shape: f32[32,32], index: 1, kind: input, shape index: {}]   ;;  %s1173_s14 = inlined_call_operand.vmem [shape: f32[1,32], index: 14, kind: input, shape index: {}]   ;;  %s1174_s15 = inlined_call_operand.vmem [shape: f32[1,32], index: 15, kind: input, shape index: {}, may-alias: {7,11,15,17}]   ;;  %s1175_s16 = inlined_call_operand.vmem [shape: f32[1,32], index: 16, kind: input, shape index: {}]   ;;  %s1176_s17 = inlined_call_operand.vmem [shape: f32[1,32], index: 17, kind: input, shape index: {}, may-alias: {7,11,15,17}]   ;;  %s1177_s19 = inlined_call_operand.vmem [shape: f32[32,32], index: 19, kind: output, shape index: {1}]   ;;  %s1178_s18 = inlined_call_operand.vmem [shape: f32[32,32], index: 18, kind: output, shape index: {0}]   ;;  %s1179_s12 = inlined_call_operand.vmem [shape: f32[32,1], index: 12, kind: input, shape index: {}]   ;;  %s1180_s9 = inlined_call_operand.<no memory space> [shape: f32[1,1], index: 9, kind: input, shape index: {}, may-alias: {9,13}]   ;;  %s1181_s7 = inlined_call_operand.vmem [shape: f32[1,32], index: 7, kind: input, shape index: {}, may-alias: {7,11,15,17}]   ;;  %s1182_s11 = inlined_call_operand.vmem [shape: f32[1,32], index: 11, kind: input, shape index: {}, may-alias: {7,11,15,17}]   ;;  %s1183_s13 = inlined_call_operand.<no memory space> [shape: f32[1,1], index: 13, kind: input, shape index: {}, may-alias: {9,13}]   ;;  %s1184_s20 = inlined_call_operand.vmem [shape: f32[32,1], index: 20, kind: output, shape index: {2}]   ;;  %s1185_s21 = inlined_call_operand.vmem [shape: f32[32,1], index: 21, kind: output, shape index: {3}]  }
   0x1   :  { %1192 = sst [smem:[#allocation4_spill]] %s1164_s2  ;;  %805 = vset.pattern.permute.xlu1 %v808_v0  ;;  %804 = vset.pattern.permute.xlu0 %v808_v0  ;;  %v83_v19 = vld [vmem:[%s1170_s5] sm:$0x1]  ;;  %v73_v29 = vld [vmem:[%s1171_s0 + $0x10] sm:$0xff]  ;;  %v72_v32 = vld [vmem:[%s1171_s0 + $0x8] sm:$0xff] }
   0x2   :  { %1193 = sst [smem:[#allocation5_spill]] %s1165_s6  ;;  %v84_v20 = vsub.f32 0.0, %v83_v19  ;;  %v89_v23 = vshrl.u32 %v88_v22, 7  ;;  %v71_v26 = vld [vmem:[%s1171_s0] sm:$0xff]  ;;  %v77_v30 = vld [vmem:[%s1172_s1 + $0x10] sm:$0xff]  ;;  %v76_v33 = vld [vmem:[%s1172_s1 + $0x8] sm:$0xff] }
   0x3   :  { %1194 = sst [smem:[#allocation6_spill]] %s1166_s3  ;;  %v75_v27 = vld [vmem:[%s1172_s1] sm:$0xff]  ;;  %v81_v34 = vsub.f32 %v73_v29, %v77_v30  ;;  %v80_v36 = vsub.f32 %v72_v32, %v76_v33  ;;  %v74_v37 = vld [vmem:[%s1171_s0 + $0x18] sm:$0xff] }
   0x4   :  { %1195 = sst [smem:[#allocation7_spill]] %s1167_s10  ;;  %v85_v21 = vmul.f32 1.442695, %v84_v20  ;;  %v90_v24 = vsub.s32 0, %v89_v23  ;;  %v79_v31 = vsub.f32 %v71_v26, %v75_v27  ;;  %v78_v38 = vld [vmem:[%s1172_s1 + $0x18] sm:$0xff] }
   0x5   :  { %1196 = sst [smem:[#allocation8_spill]] %s1168_s4  ;;  %v82_v43 = vsub.f32 %v74_v37, %v78_v38  ;;  %v711_v55 = vld [vmem:[%s1173_s14] ss:$0 sm:$0xff]  ;;  %v454_v33 = vld [vmem:[%s1179_s12 + $0x18] sm:$0xff] }
   0x6   :  { %1197 = sst [smem:[#allocation9_spill]] %s1169_s8  ;;  %806 = vpow2.f32 %v85_v21  ;;  %v712_v61 = vld [vmem:[%s1174_s15] ss:$0 sm:$0xff] }
   0x7   :  { %s1198_s26 = sld [smem:[#allocation4_spill]]  ;;  %v713_v62 = vld [vmem:[%s1175_s16] ss:$0 sm:$0xff] }
   0x8   :  { %s1199_s22 = sld [smem:[#allocation5_spill]] }
   0x9   :  { %s1200_s25 = sld [smem:[#allocation6_spill]] }
   0xa   :  { %s1201_s3 = sld [smem:[#allocation7_spill]] }
   0xb   :  { %s1203_s23 = sld [smem:[#allocation9_spill]] }
   0xd   :  { %v922_v1 = vld [vmem:[%s1198_s26 + $0x10] sm:$0xff]  ;;  %v927_v2 = vld [vmem:[%s1198_s26] sm:$0xff]  ;;  %v934_v3 = vld [vmem:[%s1198_s26 + $0x18] sm:$0xff] }
   0xe   :  { %109 = vperm.xlu1 %805, %v922_v1   ;;  %99 = vperm.xlu0 %804, %v927_v2   ;;  %v939_v4 = vld [vmem:[%s1198_s26 + $0x8] sm:$0xff]  ;;  %v124_v5 = vld [vmem:[%s1199_s22 + $0x18] sm:$0xff]  ;;  %v123_v6 = vld [vmem:[%s1199_s22 + $0x10] sm:$0xff]  ;;  %s1202_s26 = sld [smem:[#allocation8_spill]] }
   0xf   :  { %v568_v7 = vld [vmem:[%s1200_s25 + $0x8] sm:$0xff]  ;;  %v567_v8 = vld [vmem:[%s1200_s25] sm:$0xff]  ;;  %747 = vmatprep.subr.mxu0 %v124_v5  ;;  %v570_v10 = vld [vmem:[%s1200_s25 + $0x18] sm:$0xff] }
  0x10   :  { %748 = vmatpush3.msra.mxu0 %v124_v5  ;;  %v122_v9 = vld [vmem:[%s1199_s22 + $0x8] sm:$0xff]  ;;  %v569_v11 = vld [vmem:[%s1200_s25 + $0x10] sm:$0xff]  ;;  %v121_v12 = vld [vmem:[%s1199_s22] sm:$0xff] }
  0x11   :  { %749 = vmatprep.subr.mxu0 %v123_v6  ;;  %v354_v13 = vld [vmem:[%s1201_s3 + $0x18] sm:$0xff]  ;;  %v353_v50 = vld [vmem:[%s1201_s3 + $0x10] sm:$0xff]  ;;  %v352_v53 = vld [vmem:[%s1201_s3 + $0x8] sm:$0xff] }
  0x12   :  { %114 = vperm.xlu1 %805, %v934_v3   ;;  %104 = vperm.xlu0 %804, %v939_v4   ;;  %v237_v18 = vld [vmem:[%s1203_s23 + $0x18] sm:$0xff]  ;;  %v351_v56 = vld [vmem:[%s1201_s3] sm:$0xff]  ;;  %v236_v30 = vld [vmem:[%s1203_s23 + $0x10] sm:$0xff] }
  0x13   :  { %750 = vmatpush3.msra.mxu0 %v123_v6  ;;  %761 = vmatprep.subr.mxu1 %v237_v18  ;;  %v807_v25 = vpop.eup %806  ;;  %v234_v32 = vld [vmem:[%s1203_s23] sm:$0xff] }
  0x14   :  { %751 = vmatprep.subr.mxu0 %v122_v9  ;;  %v614_v14 = vld [vmem:[%s1202_s26 + $0x8] sm:$0xff]  ;;  %v613_v15 = vld [vmem:[%s1202_s26] sm:$0xff]  ;;  %v616_v16 = vld [vmem:[%s1202_s26 + $0x18] sm:$0xff]  ;;  %762 = vmatpush3.msra.mxu1 %v237_v18  ;;  %v91_v28 = vrot.slane %v807_v25, %v90_v24 }
  0x15   :  { %752 = vmatpush3.msra.mxu0 %v122_v9  ;;  %v615_v17 = vld [vmem:[%s1202_s26 + $0x10] sm:$0xff]  ;;  %763 = vmatprep.subr.mxu1 %v236_v30 }
  0x16   :  { %579 = vperm.xlu1 %805, %v568_v7   ;;  %574 = vperm.xlu0 %804, %v567_v8   ;;  %v93_v35 = vmul.f32 %v91_v28, %v79_v31  ;;  %v95_v40 = vmul.f32 %v91_v28, %v81_v34  ;;  %v94_v44 = vmul.f32 %v91_v28, %v80_v36  ;;  %v235_v31 = vld [vmem:[%s1203_s23 + $0x8] sm:$0xff]  ;;  %v27_v34 = vstv %s1180_s9 }
  0x17   :  { %753 = vmatprep.subr.mxu0 %v121_v12  ;;  %v96_v48 = vmul.f32 %v91_v28, %v82_v43  ;;  %764 = vmatpush3.msra.mxu1 %v236_v30  ;;  %28 = vst [vmem:[#allocation2] sm:$0x1] %v27_v34 }
  0x18   :  { %754 = vmatpush3.msra.mxu0 %v121_v12  ;;  %765 = vmatprep.subr.mxu1 %v235_v31 }
  0x19   :  { %775 = vmatprep.subr.mxu0 %v354_v13  ;;  %766 = vmatpush3.msra.mxu1 %v235_v31 }
  0x1a   :  { %589 = vperm.xlu1 %805, %v570_v10   ;;  %584 = vperm.xlu0 %804, %v569_v11   ;;  %v714_v11 = vld [vmem:[%s1176_s17] ss:$0 sm:$0xff] }
  0x1b   :  { %767 = vmatprep.subr.mxu1 %v234_v32 }
  0x1c   :  { %768 = vmatpush3.msra.mxu1 %v234_v32 }
  0x1d   :  { %789 = vmatprep.subr.mxu1 %v454_v33 }
  0x1e   :  { %625 = vperm.xlu1 %805, %v614_v14   ;;  %620 = vperm.xlu0 %804, %v613_v15  }
  0x22   :  { %635 = vperm.xlu1 %805, %v616_v16   ;;  %630 = vperm.xlu0 %804, %v615_v17  }
  0x89   :  { %v110_v39 = vpop.permute.xlu1 %109  ;;  %v100_v41 = vpop.permute.xlu0 %99 }
  0x8a   :  { %v1012_v42 = vmul.f32 %v100_v41, %v93_v35  ;;  %v1016_v45 = vmul.f32 %v110_v39, %v95_v40  ;;  %v691_v35 = vld [vmem:[%s1181_s7] ss:$0 sm:$0xff] }
  0x8c   :  { %755 = vmatprep.mubr.msk.f32.mxu0 %vm132_vm0, %v1012_v42 }
  0x8d   :  { %v115_v46 = vpop.permute.xlu1 %114  ;;  %v105_v47 = vpop.permute.xlu0 %104 }
  0x8e   :  { %v118_v49 = vmul.f32 %v105_v47, %v94_v44  ;;  %v120_v54 = vmul.f32 %v115_v46, %v96_v48  ;;  %v701_v46 = vld [vmem:[%s1182_s11] ss:$0 sm:$0xff]  ;;  %v453_v47 = vld [vmem:[%s1179_s12 + $0x10] sm:$0xff] }
  0x90   :  { %756 = vmatmul.mubr.msk.f32.vlgmr.msra.gmra.mxu0 %vm132_vm0, %v118_v49 }
  0x91   :  { %776 = vmatpush3.msra.mxu0 %v354_v13  ;;  %v580_v51 = vpop.permute.xlu1 %579  ;;  %v575_v52 = vpop.permute.xlu0 %574  ;;  %758 = vmatprep.mubr.msk.f32.mxu0 %vm132_vm0, %v1016_v45 }
  0x92   :  { %777 = vmatprep.subr.mxu0 %v353_v50  ;;  %v599_v59 = vmul.f32 %v711_v55, %v580_v51  ;;  %v598_v60 = vmul.f32 %v711_v55, %v575_v52 }
  0x93   :  { %778 = vmatpush3.msra.mxu0 %v353_v50  ;;  %v452_v50 = vld [vmem:[%s1179_s12 + $0x8] sm:$0xff] }
  0x94   :  { %779 = vmatprep.subr.mxu0 %v352_v53  ;;  %759 = vmatmul.mubr.msk.f32.gmra.mxu0 %vm132_vm0, %v120_v54  ;;  %v610_v7 = vadd.f32 %v712_v61, %v599_v59  ;;  %v609_v8 = vadd.f32 %v712_v61, %v598_v60 }
  0x95   :  { %780 = vmatpush3.msra.mxu0 %v352_v53  ;;  %v590_v57 = vpop.permute.xlu1 %589  ;;  %v585_v58 = vpop.permute.xlu0 %584  ;;  %783 = vmatprep.mubr.msk.f32.mxu0 %vm132_vm0, %v1012_v42 }
  0x96   :  { %781 = vmatprep.subr.mxu0 %v351_v56  ;;  %v601_v63 = vmul.f32 %v711_v55, %v590_v57  ;;  %v600_v0 = vmul.f32 %v711_v55, %v585_v58  ;;  %v451_v55 = vld [vmem:[%s1179_s12] sm:$0xff] }
  0x97   :  { %782 = vmatpush3.msra.mxu0 %v351_v56 }
  0x98   :  { %784 = vmatmul.mubr.msk.f32.vlgmr.msra.gmra.mxu0 %vm132_vm0, %v118_v49  ;;  %v612_v14 = vadd.f32 %v712_v61, %v601_v63  ;;  %v611_v15 = vadd.f32 %v712_v61, %v600_v0  ;;  %v29_v0 = vstv %s1183_s13 }
  0x99   :  { %v626_v5 = vpop.permute.xlu1 %625  ;;  %v621_v6 = vpop.permute.xlu0 %620  ;;  %786 = vmatprep.mubr.msk.f32.mxu0 %vm132_vm0, %v1016_v45  ;;  %30 = vst [vmem:[#allocation3] sm:$0x1] %v29_v0 }
  0x9a   :  { %v645_v9 = vmul.f32 %v713_v62, %v626_v5  ;;  %v644_v10 = vmul.f32 %v713_v62, %v621_v6  ;;  %v696_v5 = vld [vmem:[#allocation2] ss:$0 sm:$0xff] }
  0x9c   :  { %v649_v12 = vadd.f32 %v645_v9, %v610_v7  ;;  %v648_v13 = vadd.f32 %v644_v10, %v609_v8  ;;  %787 = vmatmul.mubr.msk.f32.gmra.mxu0 %vm132_vm0, %v120_v54 }
  0x9d   :  { %v636_v16 = vpop.permute.xlu1 %635  ;;  %v631_v17 = vpop.permute.xlu0 %630 }
  0x9e   :  { %v660_v18 = vadd.f32 %v714_v11, %v649_v12  ;;  %v659_v19 = vadd.f32 %v714_v11, %v648_v13  ;;  %v647_v20 = vmul.f32 %v713_v62, %v636_v16  ;;  %v646_v21 = vmul.f32 %v713_v62, %v631_v17 }
  0xa0   :  { %664 = vst.msk [vmem:[%s1177_s19 + $0x8] sm:$0xff] %vm132_vm0, %v660_v18  ;;  %v668_v22 = vsub.f32 %v118_v49, %v660_v18  ;;  %663 = vst.msk [vmem:[%s1177_s19] sm:$0xff] %vm132_vm0, %v659_v19  ;;  %v667_v23 = vsub.f32 %v1012_v42, %v659_v19  ;;  %v651_v24 = vadd.f32 %v647_v20, %v612_v14 }
  0xa1   :  { %v650_v25 = vadd.f32 %v646_v21, %v611_v15  ;;  %v706_v15 = vld [vmem:[#allocation3] ss:$0 sm:$0xff] }
  0xa2   :  { %672 = vst.msk [vmem:[%s1178_s18 + $0x8] sm:$0xff] %vm132_vm0, %v668_v22  ;;  %671 = vst.msk [vmem:[%s1178_s18] sm:$0xff] %vm132_vm0, %v667_v23  ;;  %v662_v26 = vadd.f32 %v714_v11, %v651_v24 }
  0xa3   :  { %v661_v27 = vadd.f32 %v714_v11, %v650_v25 }
  0xa4   :  { %666 = vst.msk [vmem:[%s1177_s19 + $0x18] sm:$0xff] %vm132_vm0, %v662_v26  ;;  %v670_v28 = vsub.f32 %v120_v54, %v662_v26 }
  0xa5   :  { %665 = vst.msk [vmem:[%s1177_s19 + $0x10] sm:$0xff] %vm132_vm0, %v661_v27  ;;  %v669_v29 = vsub.f32 %v1016_v45, %v661_v27 }
  0xa6   :  { %674 = vst.msk [vmem:[%s1178_s18 + $0x18] sm:$0xff] %vm132_vm0, %v670_v28 }
  0xa7   :  { %673 = vst.msk [vmem:[%s1178_s18 + $0x10] sm:$0xff] %vm132_vm0, %v669_v29 }
 0x150   :  { %v757_v36 = vpop.f32.mrf.mxu0 }
 0x151   :  { %v217_v37 = vadd.f32 %v757_v36, %v691_v35 }
 0x152   :  { %v211_v38 = vpop.f32.mrf.mxu0 }
 0x153   :  { %v212_v39 = vadd.f32 %v691_v35, %v211_v38  ;;  %v231_v42 = vmax.f32 %v217_v37, 0.0 }
 0x154   :  { %v760_v40 = vpop.f32.mrf.mxu0 }
 0x155   :  { %v230_v41 = vmax.f32 %v212_v39, 0.0  ;;  %v227_v43 = vadd.f32 %v760_v40, %v691_v35 }
 0x156   :  { %v221_v44 = vpop.f32.mrf.mxu0 }
 0x157   :  { %v222_v45 = vadd.f32 %v691_v35, %v221_v44  ;;  %769 = vmatprep.mubr.msk.f32.mxu1 %vm132_vm0, %v230_v41  ;;  %v233_v51 = vmax.f32 %v227_v43, 0.0 }
 0x158   :  { %770 = vmatmul.mubr.msk.f32.vlgmr.msra.gmra.mxu1 %vm132_vm0, %v231_v42  ;;  %v785_v48 = vpop.f32.mrf.mxu0 }
 0x159   :  { %v232_v49 = vmax.f32 %v222_v45, 0.0  ;;  %790 = vmatpush3.msra.mxu1 %v454_v33  ;;  %v434_v52 = vadd.f32 %v785_v48, %v701_v46 }
 0x15a   :  { %791 = vmatprep.subr.mxu1 %v453_v47  ;;  %v428_v53 = vpop.f32.mrf.mxu0 }
 0x15b   :  { %v429_v54 = vadd.f32 %v701_v46, %v428_v53  ;;  %792 = vmatpush3.msra.mxu1 %v453_v47  ;;  %772 = vmatprep.mubr.msk.f32.mxu1 %vm132_vm0, %v232_v49  ;;  %v448_v58 = vmax.f32 %v434_v52, 0.0 }
 0x15c   :  { %793 = vmatprep.subr.mxu1 %v452_v50  ;;  %773 = vmatmul.mubr.msk.f32.gmra.mxu1 %vm132_vm0, %v233_v51  ;;  %v788_v56 = vpop.f32.mrf.mxu0 }
 0x15d   :  { %v447_v57 = vmax.f32 %v429_v54, 0.0  ;;  %794 = vmatpush3.msra.mxu1 %v452_v50  ;;  %v444_v59 = vadd.f32 %v788_v56, %v701_v46 }
 0x15e   :  { %795 = vmatprep.subr.mxu1 %v451_v55  ;;  %v438_v60 = vpop.f32.mrf.mxu0 }
 0x15f   :  { %v439_v61 = vadd.f32 %v701_v46, %v438_v60  ;;  %796 = vmatpush3.msra.mxu1 %v451_v55  ;;  %797 = vmatprep.mubr.msk.f32.mxu1 %vm132_vm0, %v447_v57  ;;  %v450_v63 = vmax.f32 %v444_v59, 0.0 }
 0x160   :  { %798 = vmatmul.mubr.msk.f32.vlgmr.msra.gmra.mxu1 %vm132_vm0, %v448_v58 }
 0x161   :  { %v449_v62 = vmax.f32 %v439_v61, 0.0 }
 0x163   :  { %800 = vmatprep.mubr.msk.f32.mxu1 %vm132_vm0, %v449_v62 }
 0x164   :  { %801 = vmatmul.mubr.msk.f32.gmra.mxu1 %vm132_vm0, %v450_v63 }
 0x218   :  { %v771_v6 = vpop.f32.mrf.mxu1 }
 0x219   :  { %v329_v7 = vadd.f32 %v771_v6, %v696_v5 }
 0x21a   :  { %v323_v8 = vpop.f32.mrf.mxu1 }
 0x21b   :  { %v343_v9 = vmul.f32 %v329_v7, %v939_v4  ;;  %v324_v10 = vadd.f32 %v696_v5, %v323_v8 }
 0x21c   :  { %v774_v11 = vpop.f32.mrf.mxu1 }
 0x21d   :  { %348 = vst.msk [vmem:[%s1184_s20 + $0x8] sm:$0xff] %vm346_vm1, %v343_v9  ;;  %v342_v12 = vmul.f32 %v324_v10, %v927_v2  ;;  %v339_v13 = vadd.f32 %v774_v11, %v696_v5 }
 0x21e   :  { %v333_v14 = vpop.f32.mrf.mxu1 }
 0x21f   :  { %347 = vst.msk [vmem:[%s1184_s20] sm:$0xff] %vm346_vm1, %v342_v12  ;;  %v345_v16 = vmul.f32 %v339_v13, %v934_v3  ;;  %v334_v17 = vadd.f32 %v696_v5, %v333_v14 }
 0x220   :  { %v799_v18 = vpop.f32.mrf.mxu1 }
 0x221   :  { %350 = vst.msk [vmem:[%s1184_s20 + $0x18] sm:$0xff] %vm346_vm1, %v345_v16  ;;  %v344_v19 = vmul.f32 %v334_v17, %v922_v1  ;;  %v546_v20 = vadd.f32 %v799_v18, %v706_v15 }
 0x222   :  { %v540_v21 = vpop.f32.mrf.mxu1 }
 0x223   :  { %349 = vst.msk [vmem:[%s1184_s20 + $0x10] sm:$0xff] %vm346_vm1, %v344_v19  ;;  %v560_v22 = vmul.f32 %v546_v20, %v939_v4  ;;  %v541_v23 = vadd.f32 %v706_v15, %v540_v21 }
 0x224   :  { %v802_v24 = vpop.f32.mrf.mxu1 }
 0x225   :  { %564 = vst.msk [vmem:[%s1185_s21 + $0x8] sm:$0xff] %vm346_vm1, %v560_v22  ;;  %v559_v25 = vmul.f32 %v541_v23, %v927_v2  ;;  %v556_v26 = vadd.f32 %v802_v24, %v706_v15 }
 0x226   :  { %v550_v27 = vpop.f32.mrf.mxu1 }
 0x227   :  { %563 = vst.msk [vmem:[%s1185_s21] sm:$0xff] %vm346_vm1, %v559_v25  ;;  %v562_v28 = vmul.f32 %v556_v26, %v934_v3  ;;  %v551_v29 = vadd.f32 %v706_v15, %v550_v27 }
 0x229   :  { %566 = vst.msk [vmem:[%s1185_s21 + $0x18] sm:$0xff] %vm346_vm1, %v562_v28  ;;  %v561_v4 = vmul.f32 %v551_v29, %v922_v1 }
 0x22b   :  { %565 = vst.msk [vmem:[%s1185_s21 + $0x10] sm:$0xff] %vm346_vm1, %v561_v4 }

// kernel: fastglow2_forward.8
= control target key start
LH: loop header
LB: loop body
LE: loop exit
PB: predicated region body
PF: predicated region fallthrough
CT: control target
= control target key end

     0   :  { %s1482_s0 = inlined_call_operand.vmem [shape: f32[2,16,8], index: 0, kind: input, shape index: {}]   ;;  %s1483_s1 = inlined_call_operand.vmem [shape: f32[2,8,32], index: 1, kind: input, shape index: {}]   ;;  %s1484_s2 = inlined_call_operand.vmem [shape: f32[2,8,32], index: 2, kind: input, shape index: {}]   ;;  %s1485_s3 = inlined_call_operand.vmem [shape: f32[2,16,32], index: 3, kind: input, shape index: {}]   ;;  %s1486_s4 = inlined_call_operand.vmem [shape: f32[2,16,32], index: 4, kind: input, shape index: {}]   ;;  %s1487_s5 = inlined_call_operand.vmem [shape: f32[2,16,1], index: 5, kind: input, shape index: {}]   ;;  %s1488_s6 = inlined_call_operand.vmem [shape: f32[2,1,32], index: 6, kind: input, shape index: {}]   ;;  %s1489_s7 = inlined_call_operand.vmem [shape: f32[1,32], index: 7, kind: input, shape index: {}]   ;;  %s1490_s8 = inlined_call_operand.hbm [shape: f32[2,16,32], index: 8, kind: output, shape index: {0}]   ;;  %s1491_s9 = inlined_call_operand.hbm [shape: f32[2,16,32], index: 9, kind: output, shape index: {1}]   ;;  %s1492_s10 = inlined_call_operand.hbm [shape: f32[2,16,32], index: 10, kind: output, shape index: {2}]  }
   0x1   :  { %1499 = sst [smem:[#allocation13_spill]] %s1482_s0 }
   0x2   :  { %1500 = sst [smem:[#allocation14_spill]] %s1483_s1 }
   0x3   :  { %1501 = sst [smem:[#allocation15_spill]] %s1484_s2 }
   0x4   :  { %16 = vsyncpa [#allocation3], 0 }
   0x5   :  { %18 = vsyncpa [#allocation3 + $0x1], 0 }
   0x6   :  { %19 = vsyncpa [#allocation5], 0 }
   0x7   :  { %21 = vsyncpa [#allocation5 + $0x1], 0  ;;  %s1242_s13 = smov 0   ;;  %s1244_s14 = smov 0  }
   0x8   :  { %s1246_s15 = smov 0   ;;  %s1248_s16 = smov 0  }
   0x9 LB: > { %1502 = sst [smem:[#allocation9_spill]] %s1175_s15  ;;  %s1263_s17 = sadd.s32 4294967295, %s1179_s16   ;;  %s1179_s16 = sphi %s1248_s16, %s1514_s16   ;;  %s1175_s15 = sphi %s1246_s15, %s1516_s15   ;;  %s1171_s14 = sphi %s1244_s14, %s1518_s14   ;;  %s1167_s13 = sphi %s1242_s13, %s1517_s13  }
   0xa   : > { %s1493_s18 = sadd.s32 4294967294, %s1179_s16   ;;  %s1267_s19 = sadd.s32 1, %s1179_s16  }
   0xb   : > { %1503 = sst [smem:[#allocation10_spill]] %s1267_s19  ;;  %s237_s20 = sadd.s32 1, %s1175_s15 }
   0xc   : > { %s234_s21 = ssub.s32 %s1179_s16, %s1267_s19  ;;  %p247_p0 = scmp.ne.s32.totalorder %s1175_s15, %s1171_s14 }
   0xd   : > { %p235_p1 = scmp.eq.s32.totalorder %s234_s21, 0  ;;  %p248_p2 = scmp.eq.s32.totalorder %s1263_s17, 1 }
   0xe   : > { %p253_p3 = scmp.ne.s32.totalorder %s1171_s14, %s1167_s13  ;;  %p254_p4 = scmp.eq.s32.totalorder %s1493_s18, 1 }
   0xf   : > { %s1280_s22 = scalar_select %p235_p1, %s1175_s15, %s237_s20  }
  0x10   : > { %p1282_p5 = por %p248_p2, %p247_p0  ;;  %p1286_p6 = por %p254_p4, %p253_p3 }
  0x11   : > { %1504 = sst [smem:[#allocation11_spill]] %s1280_s22  ;;  %p951_p7 = scmp.ge.s32.totalorder %s1179_s16, 1 }
  0x12   : > { %s1506_s24 = scalar_select %p1286_p6, 1, 0 }
  0x13   : > { %p379_p8 = scmp.lt.s32.totalorder %s1179_s16, 3 }
  0x14   : > { %1507 = sst [smem:[#allocation12_spill]] %s1506_s24 }
  0x15   : > { %p380_p9 = pnand %p951_p7, %p379_p8 }
  0x16   : > { %p453_p10 = scmp.lt.s32.totalorder (!%p380_p9), %s1263_s17, 1  ;;  %s1508_s2 = sld [smem:[#allocation15_spill]] (!%p380_p9) }
  0x17   : > { %383 = sbr.rel (%p380_p9) target bundleno = 302 (0x12e), region = 52  ;;  %s1509_s0 = sld [smem:[#allocation13_spill]] (!%p380_p9) }
  0x18   : > { %s1510_s1 = sld [smem:[#allocation14_spill]] (!%p380_p9)  ;;  %s1498_s15 = sand.u32 (!%p380_p9), 1, %s1171_s14  }
  0x19   : > { %s1321_s18 = sshll.u32 (!%p380_p9), %s1498_s15, 4  ;;  %s705_s29 = sand.u32 (!%p380_p9), 1, %s1263_s17  }
  0x1a   : > { %s1360_s12 = scalar_lea.sflag (!%p380_p9), [#allocation5], %s705_s29 }
  0x1c   : > { %v1181_v0 = vmov 0   ;;  %s1294_s25 = scalar_select %p453_p10, %s1263_s17, 1  ;;  %vm487_vm0 = vcmask 64512   ;;  %v664_v7 = vld [vmem:[%s1489_s7] sm:$0x1]  ;;  %vm645_vm1 = vcmask 261120  }
  0x1d   : > { %1056 = vset.pattern.permute.xlu0 %v1181_v0  ;;  %v665_v8 = vmul.f32 1.442695, %v664_v7 }
  0x1e   : > { %s957_s26 = sshll.u32 %s1294_s25, 3  ;;  %s1298_s27 = sshll.u32 %s1294_s25, 4 }
  0x1f   : > { %s465_s30 = scalar_lea.vmem %s1508_s2, %s957_s26  ;;  %s457_s20 = scalar_lea.vmem %s1509_s0, %s1298_s27  ;;  %1057 = vpow2.f32 %v665_v8 }
  0x20   : > { %v569_v1 = vld [vmem:[%s465_s30] sm:$0xff]  ;;  %v485_v3 = vld [vmem:[%s457_s20 + $0x8] sm:$0xff]  ;;  %s461_s22 = scalar_lea.vmem %s1510_s1, %s957_s26  ;;  %s480_s24 = scalar_lea.vmem %s1487_s5, %s1298_s27 }
  0x21   : > { %v484_v2 = vld [vmem:[%s457_s20] sm:$0xff]  ;;  %999 = vmatprep.subr.mxu1 %v569_v1  ;;  %v685_v6 = vld [vmem:[%s480_s24 + $0x8] sm:$0xff]  ;;  %s445_s26 = scalar_lea.vmem [#allocation4], %s1321_s18  ;;  %s1329_s30 = sshll.u32 %s1263_s17, 8 }
  0x22   : > { %1001 = vmatprep.mubr.msk.f32.mxu1 %vm487_vm0, %v484_v2  ;;  %v486_v4 = vld [vmem:[%s461_s22] sm:$0xff]  ;;  %1000 = vmatpush3.msra.mxu1 %v569_v1  ;;  %s740_s28 = sshll.u32 %s445_s26, 4  ;;  %s1342_s17 = scalar_lea.hbm %s1491_s9, %s1329_s30  ;;  %s1331_s28 = int_to_ptr.vmem [resolvable:$true] %s740_s28 }
  0x23   : > { %v684_v5 = vld [vmem:[%s480_s24] sm:$0xff]  ;;  %994 = vmatprep.subr.mxu0 %v486_v4  ;;  %1002 = vmatmul.mubr.msk.f32.vlgmr.msra.gmra.mxu1 %vm487_vm0, %v485_v3  ;;  %s1334_s24 = scalar_lea.vmem [#allocation2], %s1321_s18  ;;  %s1356_s22 = scalar_lea.hbm %s1490_s8, %s1329_s30 }
  0x24   : > { %995 = vmatpush3.msra.mxu0 %v486_v4  ;;  %996 = vmatprep.mubr.msk.f32.mxu0 %vm487_vm0, %v484_v2  ;;  %s724_s11 = sshll.u32 %s1334_s24, 4  ;;  %s1063_s20 = scalar_lea.vmem %s1331_s28, 256  ;;  %s1350_s11 = int_to_ptr.vmem [resolvable:$true] %s724_s11 }
  0x25   : > { %688 = vperm.xlu0 %1056, %v684_v5   ;;  %997 = vmatmul.mubr.msk.f32.vlgmr.msra.gmra.mxu0 %vm487_vm0, %v485_v3  ;;  %p1064_p11 = scmp.ne.s32.totalorder %s1331_s28, %s1063_s20 }
  0x27   : > { %p1065_p12 = pnand %p1064_p11, %p1282_p5 }
  0x29   : > { %693 = vperm.xlu0 %1056, %v685_v6   ;;  %p1066_p13 = pneg %p1065_p12 }
  0xe3   : > { %v1003_v9 = vpop.f32.mrf.mxu1 }
  0xe4   : > { %649 = vst.msk [vmem:[%s445_s26 + $0x8] sm:$0xff] %vm645_vm1, %v1003_v9  ;;  %v652_v10 = vmul.f32 1.442695, %v1003_v9 }
  0xe5   : > { %v636_v11 = vpop.f32.mrf.mxu1  ;;  %v1344_v12 = vpop.f32.mrf.mxu0 }
  0xe6   : > { %1059 = vpow2.f32 %v652_v10  ;;  %648 = vst.msk [vmem:[%s445_s26] sm:$0xff] %vm645_vm1, %v636_v11  ;;  %v650_v13 = vmul.f32 1.442695, %v636_v11  ;;  %647 = vst.msk [vmem:[%s1334_s24 + $0x8] sm:$0xff] %vm645_vm1, %v1344_v12  ;;  %s1182_s26 = smov [#allocation4]  }
  0xe7   : > { %v1358_v14 = vpop.f32.mrf.mxu0  ;;  %s1067_s15 = sshll.u32 %s1182_s26, 4  ;;  %s1068_s15 = int_to_ptr.vmem [resolvable:$false] %s1067_s15 }
  0xe8   : > { %s1069_s0 = scalar_lea.vmem %s1068_s15, 512  ;;  %p1070_p0 = scmp.lt.s32.totalorder %s1331_s28, %s1068_s15 }
  0xe9   : > { %p1071_p1 = scmp.lt.s32.totalorder %s1069_s0, %s1063_s20 }
  0xeb   : > { %p1072_p2 = por %p1071_p1, %p1070_p0 }
  0xed   : > { %p1073_p3 = pnand %p1072_p2, %p1066_p13 }
  0xef   : > { %1076 = shalt.err (!%p1073_p3)
}
  0xf0   : > { %s1077_s29 = scalar_lea.hbm %s1342_s17, 256  ;;  %s1081_s26 = scalar_lea.hbm %s1491_s9, 512 }
  0xf1   : > { %p1078_p4 = scmp.ne.s32.totalorder %s1342_s17, %s1077_s29  ;;  %p1082_p9 = scmp.lt.s32.totalorder %s1342_s17, %s1491_s9 }
  0xf2   : > { %p1083_p10 = scmp.lt.s32.totalorder %s1081_s26, %s1077_s29 }
  0xf3   : > { %p1079_p7 = pnand %p1078_p4, %p1282_p5 }
  0xf4   : > { %p1084_p11 = por %p1083_p10, %p1082_p9 }
  0xf5   : > { %p1080_p8 = pneg %p1079_p7 }
  0xf7   : > { %p1085_p12 = pnand %p1084_p11, %p1080_p8 }
  0xf9   : > { %1088 = shalt.err (!%p1085_p12)
}
  0xfa   : > { %s1183_s0 = smov 128   ;;  %s1184_s15 = smov 8   ;;  %1061 = vpow2.f32 %v650_v13  ;;  %646 = vst.msk [vmem:[%s1334_s24] sm:$0xff] %vm645_vm1, %v1358_v14 }
  0xfb   : > { %1005 = dma.vmem_to_hbm [thread:$0]  (%p1282_p5), %s1331_s28, 256, %s1342_s17, %s1360_s12, %s1183_s0, %s1183_s0, %s1184_s15  }
  0xfc   : > { %s1511_s1 = sand.u32 1, %s1171_s14   ;;  %s1089_s20 = scalar_lea.vmem %s1350_s11, 256 }
  0xfd   : > { %s701_s2 = scalar_lea.sflag [#allocation3], %s1511_s1  ;;  %p1090_p13 = scmp.ne.s32.totalorder %s1350_s11, %s1089_s20 }
  0xfe   : > { %s1185_s29 = smov [#allocation2]  }
  0xff   : > { %p1091_p0 = pnand %p1090_p13, %p1282_p5  ;;  %s1093_s21 = sshll.u32 %s1185_s29, 4  ;;  %s1094_s21 = int_to_ptr.vmem [resolvable:$false] %s1093_s21 }
 0x100   : > { %s1095_s19 = scalar_lea.vmem %s1094_s21, 512  ;;  %p1096_p2 = scmp.lt.s32.totalorder %s1350_s11, %s1094_s21 }
 0x101   : > { %p1092_p1 = pneg %p1091_p0  ;;  %p1097_p3 = scmp.lt.s32.totalorder %s1095_s19, %s1089_s20 }
 0x103   : > { %p1098_p4 = por %p1097_p3, %p1096_p2 }
 0x105   : > { %p1099_p7 = pnand %p1098_p4, %p1092_p1 }
 0x107   : > { %1102 = shalt.err (!%p1099_p7)
}
 0x108   : > { %s1103_s28 = scalar_lea.hbm %s1356_s22, 256  ;;  %s1107_s26 = scalar_lea.hbm %s1490_s8, 512 }
 0x109   : > { %p1104_p8 = scmp.ne.s32.totalorder %s1356_s22, %s1103_s28  ;;  %p1108_p11 = scmp.lt.s32.totalorder %s1356_s22, %s1490_s8 }
 0x10a   : > { %p1109_p12 = scmp.lt.s32.totalorder %s1107_s26, %s1103_s28 }
 0x10b   : > { %p1105_p9 = pnand %p1104_p8, %p1282_p5 }
 0x10c   : > { %p1110_p13 = por %p1109_p12, %p1108_p11 }
 0x10d   : > { %p1106_p10 = pneg %p1105_p9 }
 0x10f   : > { %p1111_p0 = pnand %p1110_p13, %p1106_p10 }
 0x111   : > { %1114 = shalt.err (!%p1111_p0)
}
 0x112   : > { %1004 = dma.vmem_to_hbm [thread:$0]  (%p1282_p5), %s1350_s11, 256, %s1356_s22, %s701_s2, %s1183_s0, %s1183_s0, %s1184_s15   ;;  %v668_v15 = vlaneseq  ;;  %v1058_v18 = vpop.eup %1057  ;;  %v689_v29 = vpop.permute.xlu0 %688 }
 0x113   : > { %s475_s19 = scalar_lea.vmem %s1486_s4, %s1298_s27  ;;  %s470_s17 = scalar_lea.vmem %s1485_s3, %s1298_s27  ;;  %v1060_v20 = vpop.eup %1059 }
 0x114   : > { %v669_v16 = vshrl.u32 %v668_v15, 7  ;;  %v655_v17 = vld [vmem:[%s475_s19 + $0x8] sm:$0xff]  ;;  %v654_v21 = vld [vmem:[%s475_s19] sm:$0xff]  ;;  %v1062_v23 = vpop.eup %1061  ;;  %s483_s2 = scalar_lea.vmem %s1488_s6, %s1294_s25  ;;  %s452_s27 = scalar_lea.vmem [#allocation6], %s1321_s18 }
 0x115   : > { %v657_v22 = vmul.f32 %v1060_v20, %v655_v17  ;;  %v661_v24 = vld [vmem:[%s470_s17 + $0x8] sm:$0xff]  ;;  %v656_v26 = vmul.f32 %v1062_v23, %v654_v21  ;;  %v660_v28 = vld [vmem:[%s470_s17] sm:$0xff]  ;;  %s756_s26 = sshll.u32 %s452_s27, 4  ;;  %s1436_s29 = scalar_lea.hbm %s1492_s10, %s1329_s30  ;;  %s1429_s26 = int_to_ptr.vmem [resolvable:$true] %s756_s26 }
 0x116   : > { %v670_v19 = vsub.s32 0, %v669_v16  ;;  %v969_v32 = vld [vmem:[%s483_s2] ss:$0 sm:$0xff]  ;;  %v694_v37 = vpop.permute.xlu0 %693  ;;  %s1115_s18 = scalar_lea.vmem %s1429_s26, 256  ;;  %s1186_s20 = smov [#allocation6]  }
 0x117   : > { %v659_v25 = vadd.f32 %v1344_v12, %v657_v22  ;;  %v658_v31 = vadd.f32 %v656_v26, %v1358_v14  ;;  %p1116_p1 = scmp.ne.s32.totalorder %s1429_s26, %s1115_s18  ;;  %s1119_s21 = sshll.u32 %s1186_s20, 4  ;;  %s1120_s21 = int_to_ptr.vmem [resolvable:$false] %s1119_s21 }
 0x118   : > { %v671_v27 = vrot.slane %v1058_v18, %v670_v19  ;;  %s1121_s19 = scalar_lea.vmem %s1120_s21, 512  ;;  %p1122_p4 = scmp.lt.s32.totalorder %s1429_s26, %s1120_s21 }
 0x119   : > { %v663_v30 = vadd.f32 %v661_v24, %v659_v25  ;;  %v662_v33 = vadd.f32 %v660_v28, %v658_v31  ;;  %p1117_p2 = pnand %p1116_p1, %p1282_p5  ;;  %p1123_p7 = scmp.lt.s32.totalorder %s1121_s19, %s1115_s18 }
 0x11b   : > { %v674_v34 = vmul.f32 %v671_v27, %v663_v30  ;;  %v673_v35 = vmul.f32 %v671_v27, %v662_v33  ;;  %p1118_p3 = pneg %p1117_p2  ;;  %p1124_p8 = por %p1123_p7, %p1122_p4 }
 0x11d   : > { %v683_v36 = vadd.f32 %v969_v32, %v674_v34  ;;  %v682_v38 = vadd.f32 %v969_v32, %v673_v35  ;;  %p1125_p9 = pnand %p1124_p8, %p1118_p3 }
 0x11f   : > { %v697_v39 = vmul.f32 %v694_v37, %v683_v36  ;;  %v696_v40 = vmul.f32 %v689_v29, %v682_v38 }
 0x121   : > { %699 = vst.msk [vmem:[%s452_s27 + $0x8] sm:$0xff] %vm645_vm1, %v697_v39  ;;  %698 = vst.msk [vmem:[%s452_s27] sm:$0xff] %vm645_vm1, %v696_v40 }
 0x122   : > { %1128 = shalt.err (!%p1125_p9)
}
 0x123   : > { %s1129_s30 = scalar_lea.hbm %s1436_s29, 256  ;;  %s1133_s17 = scalar_lea.hbm %s1492_s10, 512 }
 0x124   : > { %p1130_p10 = scmp.ne.s32.totalorder %s1436_s29, %s1129_s30  ;;  %p1134_p13 = scmp.lt.s32.totalorder %s1436_s29, %s1492_s10 }
 0x125   : > { %p1135_p0 = scmp.lt.s32.totalorder %s1133_s17, %s1129_s30 }
 0x126   : > { %p1131_p11 = pnand %p1130_p10, %p1282_p5 }
 0x127   : > { %p1136_p1 = por %p1135_p0, %p1134_p13 }
 0x128   : > { %p1132_p12 = pneg %p1131_p11 }
 0x12a   : > { %p1137_p2 = pnand %p1136_p1, %p1132_p12 }
 0x12c   : > { %1140 = shalt.err (!%p1137_p2)
}
 0x12d   : > { %1006 = dma.vmem_to_hbm [thread:$0]  (%p1282_p5), %s1429_s26, 256, %s1436_s29, %s1360_s12, %s1183_s0, %s1183_s0, %s1184_s15  }
 0x12e PF: > { %p1020_p3 = scmp.ge.s32.totalorder %s1179_s16, 2  ;;  %s771_s27 = sand.u32 1, %s1167_s13  }
 0x12f   : > { %s772_s25 = scalar_lea.sflag [#allocation3], %s771_s27 }
 0x130   : > { %p1011_p4 = pnand %p1020_p3, %p1286_p6 }
 0x132   : > { %p1012_p7 = pneg %p1011_p4 }
 0x134   : > { %1158 = dma.done.wait (%p1012_p7), %s772_s25, 256  }
 0x135   : > { %1160 = vsyncadd (%p1012_p7), %s772_s25, 4294967040  ;;  %s1513_s23 = sadd.s32 4294967294, %s1179_s16  }
 0x136   : > { %s780_s1 = sand.u32 1, %s1513_s23  }
 0x137   : > { %s781_s18 = scalar_lea.sflag [#allocation5], %s780_s1 }
 0x138   : > { %1162 = dma.done.wait (%p1012_p7), %s781_s18, 512  }
 0x139   : > { %1164 = vsyncadd (%p1012_p7), %s781_s18, 4294966784  ;;  %s1514_s16 = sld [smem:[#allocation10_spill]]  ;;  %s1517_s13 = smov %s1171_s14 }
 0x13a   : > { %s1515_s12 = sld [smem:[#allocation9_spill]] }
 0x13b   : > { %s1516_s15 = sld [smem:[#allocation11_spill]] }
 0x13f   : > { %p24_p5 = scmp.ge.s32.totalorder %s1514_s16, 4  }
 0x140   : > { %s1518_s14 = smov %s1515_s12 }
 0x141   :  { %26 = sbr.rel (!%p24_p5) target bundleno = 9 (0x9), region = 137 }
 0x146   :  { %795 = vsyncpa [#allocation3], 1 }
 0x147   :  { %797 = vsyncpa [#allocation3 + $0x1], 1 }
 0x148   :  { %798 = vsyncpa [#allocation5], 1 }
 0x149   :  { %800 = vsyncpa [#allocation5 + $0x1], 1 }

</bundles_post_ra>
